<compile_context>
chip_gen: v6e
topology: v6e:2x2x1
jax: 0.10.0
libtpu: 0.0.40
codegen_flags: <defaults>
</compile_context>

<pallas_src>
import functools
import math

import jax
import jax.numpy as jnp
from jax import lax
from jax.experimental import pallas as pl
from jax.experimental.pallas import tpu as pltpu


# ---------------------------------------------------------------------------
# In-kernel helpers (traced inside the Pallas body)
# ---------------------------------------------------------------------------
def _layernorm(x, g, b, eps=1e-5):
    mu = jnp.mean(x, axis=-1, keepdims=True)
    var = jnp.mean((x - mu) ** 2, axis=-1, keepdims=True)
    return (x - mu) * lax.rsqrt(var + eps) * g + b


def _gelu_exact(x):
    # nn.GELU default = exact erf-based GELU (kept exact / f32 to match PyTorch)
    return 0.5 * x * (1.0 + lax.erf(x * (1.0 / math.sqrt(2.0))))


def _round_up(v, m):
    return -(-v // m) * m


def _heads_per_group(num_heads, head_dim, target_lanes=256):
    """Largest divisor of num_heads whose fused-Q output width reaches the
    target MXU result width (256 on v6e/v7x; anything >=128 is fine on v5e)."""
    g = 1
    for cand in range(1, num_heads + 1):
        if num_heads % cand:
            continue
        g = cand
        if cand * head_dim >= target_lanes:
            break
    return g


def _vmem_limit_bytes():
    cap = None
    try:
        cap = getattr(pltpu.get_tpu_info(), "vmem_capacity_bytes", None)
    except Exception:
        cap = None
    if not cap:
        return 48 * 1024 * 1024
    # leave headroom for compiler-internal scratch / double-buffered act tiles:
    # v7x (64 MiB) -> 40 MiB, v5e/v6e (128 MiB) -> 64 MiB.
    return max(16 * 1024 * 1024, min(int(cap) * 5 // 8, 64 * 1024 * 1024))


# ---------------------------------------------------------------------------
# Pallas kernel: one (batch, query-tile) cell of the transformer block
# ---------------------------------------------------------------------------
def block_kernel(x_ref, g1_ref, b1_ref,
                 wq_ref, wkv_ref, wproj_ref, bproj_ref,
                 g2_ref, b2_ref, w1_ref, bfc1_ref, w2_ref, bfc2_ref,
                 o_ref, acc_ref, *, num_heads, heads_per_group, q_tile, n_valid):
    N_pad, C = x_ref.shape[1], x_ref.shape[2]
    hd = C // num_heads
    G = heads_per_group
    n_groups = num_heads // G
    tq = q_tile

    qi = pl.program_id(1)
    q_start = pl.multiple_of(qi * tq, 8)

    # ---- norm1 over the full (padded) sequence: K/V source, f32 stats ----
    x_full = x_ref[0]                                             # (N_pad, C) f32
    xn_full_b = _layernorm(x_full, g1_ref[0], b1_ref[0]).astype(jnp.bfloat16)

    # ---- norm1 over this query tile (recomputed; cheap, keeps slices static) ----
    x_tile = x_ref[0, pl.ds(q_start, tq), :]                      # (tq, C) f32
    xn_tile_b = _layernorm(x_tile, g1_ref[0], b1_ref[0]).astype(jnp.bfloat16)

    # ---- additive key-padding bias (only materialized if padding exists) ----
    if n_valid < N_pad:
        key_ids = lax.broadcasted_iota(jnp.int32, (1, N_pad), 1)
        key_bias = jnp.where(key_ids < n_valid, 0.0, -1e30).astype(jnp.float32)
    else:
        key_bias = None

    # ---- attention: head-group loop, fused wide QKV dots ----
    acc_ref[...] = jnp.zeros_like(acc_ref)

    @pl.loop(0, n_groups)
    def _(g):
        # w_q already carries the 1/sqrt(hd) scale (folded host-side, no bias)
        q_g = jnp.dot(xn_tile_b, wq_ref[g],
                      preferred_element_type=jnp.float32)          # (tq, G*hd)
        kv_g = jnp.dot(xn_full_b, wkv_ref[g],
                       preferred_element_type=jnp.float32)         # (N_pad, 2*G*hd)
        for i in range(G):                                         # static lane slices
            qh = q_g[:, i * hd:(i + 1) * hd].astype(jnp.bfloat16)
            kh = kv_g[:, i * hd:(i + 1) * hd].astype(jnp.bfloat16)
            vh = kv_g[:, (G + i) * hd:(G + i + 1) * hd].astype(jnp.bfloat16)

            # scores = qh @ kh.T (contract head_dim), f32 accumulate
            s = lax.dot_general(qh, kh, (((1,), (1,)), ((), ())),
                                preferred_element_type=jnp.float32)  # (tq, N_pad)
            if key_bias is not None:
                s = s + key_bias
            s = s - jnp.max(s, axis=-1, keepdims=True)
            p = jnp.exp(s)
            p = p * pl.reciprocal(jnp.sum(p, axis=-1, keepdims=True), approx=True)

            oh = jnp.dot(p.astype(jnp.bfloat16), vh,
                         preferred_element_type=jnp.float32)         # (tq, hd)
            # accumulate this head's contribution to the lane-dense (tq, C)
            # output projection directly in VMEM scratch
            acc_ref[...] += jnp.dot(oh.astype(jnp.bfloat16), wproj_ref[g * G + i],
                                    preferred_element_type=jnp.float32)

    x1 = x_tile + acc_ref[...] + bproj_ref[0]                      # residual 1

    # ---- norm2 + MLP (f32 stats / GELU, bf16 matmul operands) ----
    x2n = _layernorm(x1, g2_ref[0], b2_ref[0])
    h1 = jnp.dot(x2n.astype(jnp.bfloat16), w1_ref[...],
                 preferred_element_type=jnp.float32) + bfc1_ref[0]
    h1 = _gelu_exact(h1)
    y2 = jnp.dot(h1.astype(jnp.bfloat16), w2_ref[...],
                 preferred_element_type=jnp.float32) + bfc2_ref[0]

    o_ref[0] = (x1 + y2).astype(o_ref.dtype)                       # residual 2


# ---------------------------------------------------------------------------
# Host-side weight re-layout: call ONCE per model and cache the result
# ---------------------------------------------------------------------------
def prepare_block_params(params, num_heads, *, qkv_group_lanes=256):
    C = params["w_qkv"].shape[0]
    hd = C // num_heads
    scale = hd ** (-0.5)
    G = _heads_per_group(num_heads, hd, qkv_group_lanes)
    ng = num_heads // G

    wq, wk, wv = jnp.split(params["w_qkv"], 3, axis=1)             # each (C, C)
    # fold softmax scale into w_q (exact: qkv has no bias); group-fused slabs
    wq_grp = (wq * scale).reshape(C, ng, G * hd).transpose(1, 0, 2).astype(jnp.bfloat16)
    wk_grp = wk.reshape(C, ng, G * hd)
    wv_grp = wv.reshape(C, ng, G * hd)
    wkv_grp = jnp.concatenate([wk_grp, wv_grp], axis=-1).transpose(1, 0, 2).astype(jnp.bfloat16)
    wproj = params["w_proj"].reshape(num_heads, hd, C).astype(jnp.bfloat16)

    return {
        "g1": params["g1"], "b1": params["b1"],
        "wq_grp": wq_grp, "wkv_grp": wkv_grp, "wproj": wproj,
        "b_proj": params["b_proj"],
        "g2": params["g2"], "b2": params["b2"],
        "w_fc1": params["w_fc1"].astype(jnp.bfloat16), "b_fc1": params["b_fc1"],
        "w_fc2": params["w_fc2"].astype(jnp.bfloat16), "b_fc2": params["b_fc2"],
        "num_heads": num_heads, "heads_per_group": G,
    }


# ---------------------------------------------------------------------------
# Wrapper: pad token dim, build specs, pallas_call, slice back
# ---------------------------------------------------------------------------
def vit_block(x, prepared, *, q_tile=128):
    B, N, C = x.shape
    num_heads = prepared["num_heads"]
    G = prepared["heads_per_group"]
    ng = num_heads // G
    hd = C // num_heads
    H = prepared["w_fc1"].shape[1]

    # token-dim padding (sublane / MXU alignment); padded keys masked in-kernel
    n8 = _round_up(N, 8)
    tq = min(_round_up(q_tile, 8), n8)
    N_pad = _round_up(n8, tq)
    n_qt = N_pad // tq
    xp = jnp.pad(x, ((0, 0), (0, N_pad - N), (0, 0))) if N_pad != N else x

    kernel = functools.partial(block_kernel, num_heads=num_heads,
                               heads_per_group=G, q_tile=tq, n_valid=N)

    def winv(shape):
        # grid-invariant operand: single buffer (no pointless double-buffering)
        nd = len(shape)
        return pl.BlockSpec(shape, lambda b, qi: (0,) * nd,
                            pipeline_mode=pl.Buffered(1))

    in_specs = [
        pl.BlockSpec((1, N_pad, C), lambda b, qi: (b, 0, 0)),   # x (full seq / batch)
        winv((1, C)), winv((1, C)),                             # norm1 gamma / beta
        winv((ng, C, G * hd)),                                  # fused w_q groups (scaled)
        winv((ng, C, 2 * G * hd)),                              # fused w_k|w_v groups
        winv((num_heads, hd, C)),                               # w_proj per-head slabs
        winv((1, C)),                                           # proj bias
        winv((1, C)), winv((1, C)),                             # norm2 gamma / beta
        winv((C, H)), winv((1, H)),                             # fc1 weight / bias
        winv((H, C)), winv((1, C)),                             # fc2 weight / bias
    ]
    out_specs = pl.BlockSpec((1, tq, C), lambda b, qi: (b, qi, 0))

    # Advisory cost estimate so XLA can schedule around this custom call.
    flops_per_tile = (
        2 * tq * C * C                              # Q projection
        + 2 * N_pad * C * 2 * C                     # K/V projection (per query tile)
        + num_heads * 2 * tq * N_pad * hd * 2       # QK^T + PV
        + 2 * tq * C * C                            # output projection
        + 2 * tq * C * H + 2 * tq * H * C           # MLP
    )
    flops = B * n_qt * flops_per_tile
    transcendentals = B * n_qt * (num_heads * tq * N_pad + tq * H)
    bytes_accessed = (2 * B * N_pad * C * 4                     # x in + out (f32)
                      + (4 * C * C + 2 * C * H) * 2             # bf16 weights
                      + (6 * C + 2 * H) * 4)                    # f32 LN params / biases

    out = pl.pallas_call(
        kernel,
        out_shape=jax.ShapeDtypeStruct((B, N_pad, C), x.dtype),
        grid_spec=pltpu.PrefetchScalarGridSpec(
            num_scalar_prefetch=0,
            grid=(B, n_qt),
            in_specs=in_specs,
            out_specs=out_specs,
            scratch_shapes=[pltpu.VMEM((tq, C), jnp.float32)],
        ),
        compiler_params=pltpu.CompilerParams(
            dimension_semantics=("parallel", "parallel"),
            vmem_limit_bytes=_vmem_limit_bytes(),
        ),
        cost_estimate=pl.CostEstimate(
            flops=flops,
            transcendentals=transcendentals,
            bytes_accessed=bytes_accessed,
        ),
    )(xp, prepared["g1"], prepared["b1"],
      prepared["wq_grp"], prepared["wkv_grp"], prepared["wproj"], prepared["b_proj"],
      prepared["g2"], prepared["b2"],
      prepared["w_fc1"], prepared["b_fc1"], prepared["w_fc2"], prepared["b_fc2"])

    return out[:, :N, :] if N_pad != N else out


# ---------------------------------------------------------------------------
# Pure-JAX reference (mirrors the PyTorch forward, eval mode, f32 weights)
# ---------------------------------------------------------------------------
def ref_block(x, params, num_heads):
    B, N, C = x.shape
    hd = C // num_heads
    scale = hd ** (-0.5)

    def ln(z, g, b):
        mu = jnp.mean(z, axis=-1, keepdims=True)
        var = jnp.mean((z - mu) ** 2, axis=-1, keepdims=True)
        return (z - mu) / jnp.sqrt(var + 1e-5) * g[0] + b[0]

    xn = ln(x, params["g1"], params["b1"])
    qkv = xn @ params["w_qkv"]                                    # (B, N, 3C)
    qkv = qkv.reshape(B, N, 3, num_heads, hd).transpose(2, 0, 3, 1, 4)
    q, k, v = qkv[0], qkv[1], qkv[2]                              # (B, h, N, hd)
    attn = jnp.einsum("bhnd,bhmd->bhnm", q, k) * scale
    attn = jax.nn.softmax(attn, axis=-1)
    y = jnp.einsum("bhnm,bhmd->bhnd", attn, v)
    y = y.transpose(0, 2, 1, 3).reshape(B, N, C)
    y = y @ params["w_proj"] + params["b_proj"][0]
    x1 = x + y

    x2n = ln(x1, params["g2"], params["b2"])
    h1 = x2n @ params["w_fc1"] + params["b_fc1"][0]
    h1 = 0.5 * h1 * (1.0 + lax.erf(h1 / jnp.sqrt(2.0)))
    y2 = h1 @ params["w_fc2"] + params["b_fc2"][0]
    return x1 + y2


# ---------------------------------------------------------------------------
if __name__ == "__main__":
    key = jax.random.PRNGKey(0)

    def make_params(k, C, H):
        ks = jax.random.split(k, 11)
        return {
            "g1": 1.0 + 0.05 * jax.random.normal(ks[0], (1, C), jnp.float32),
            "b1": 0.05 * jax.random.normal(ks[1], (1, C), jnp.float32),
            "w_qkv": 0.02 * jax.random.normal(ks[2], (C, 3 * C), jnp.float32),
            "w_proj": 0.02 * jax.random.normal(ks[3], (C, C), jnp.float32),
            "b_proj": 0.02 * jax.random.normal(ks[4], (1, C), jnp.float32),
            "g2": 1.0 + 0.05 * jax.random.normal(ks[5], (1, C), jnp.float32),
            "b2": 0.05 * jax.random.normal(ks[6], (1, C), jnp.float32),
            "w_fc1": 0.02 * jax.random.normal(ks[7], (C, H), jnp.float32),
            "b_fc1": 0.02 * jax.random.normal(ks[8], (1, H), jnp.float32),
            "w_fc2": 0.02 * jax.random.normal(ks[9], (H, C), jnp.float32),
            "b_fc2": 0.02 * jax.random.normal(ks[10], (1, C), jnp.float32),
        }

    C, num_heads = 32, 4
    H = int(C * 4.0)
    k1, k2, k3 = jax.random.split(key, 3)
    params = make_params(k1, C, H)
    prepared = prepare_block_params(params, num_heads)   # cached once per model

    # --- test 1: aligned shapes, single query tile per batch element ---
    B, N = 2, 8
    x = jax.random.normal(k2, (B, N, C), jnp.float32)
    out = vit_block(x, prepared)
    jax.block_until_ready(out)
    ref = ref_block(x, params, num_heads)
    assert out.shape == (B, N, C)
    # bf16 MXU operands + approx softmax reciprocal -> relaxed tolerance
    assert jnp.allclose(out, ref, atol=1e-2, rtol=1e-2), \
        f"max err = {jnp.max(jnp.abs(out - ref))}"

    # --- test 2: unaligned N (padding + key mask) and two query tiles ---
    B2, N2 = 1, 13
    x2 = jax.random.normal(k3, (B2, N2, C), jnp.float32)
    out2 = vit_block(x2, prepared, q_tile=8)             # N padded to 16 -> 2 tiles
    jax.block_until_ready(out2)
    ref2 = ref_block(x2, params, num_heads)
    assert out2.shape == (B2, N2, C)
    assert jnp.allclose(out2, ref2, atol=1e-2, rtol=1e-2), \
        f"max err = {jnp.max(jnp.abs(out2 - ref2))}"

    print("KERNEL_OK")
</pallas_src>

<mosaic_0001>
module attributes {stable_mosaic.version = 11 : i64} {
  func.func @block_kernel(%arg0: i32, %arg1: i32, %arg2: memref<1x8x32xf32, #tpu.memory_space<vmem>>, %arg3: memref<1x32xf32, #tpu.memory_space<vmem>>, %arg4: memref<1x32xf32, #tpu.memory_space<vmem>>, %arg5: memref<1x32x32xbf16, #tpu.memory_space<vmem>>, %arg6: memref<1x32x64xbf16, #tpu.memory_space<vmem>>, %arg7: memref<4x8x32xbf16, #tpu.memory_space<vmem>>, %arg8: memref<1x32xf32, #tpu.memory_space<vmem>>, %arg9: memref<1x32xf32, #tpu.memory_space<vmem>>, %arg10: memref<1x32xf32, #tpu.memory_space<vmem>>, %arg11: memref<32x128xbf16, #tpu.memory_space<vmem>>, %arg12: memref<1x128xf32, #tpu.memory_space<vmem>>, %arg13: memref<128x32xbf16, #tpu.memory_space<vmem>>, %arg14: memref<1x32xf32, #tpu.memory_space<vmem>>, %arg15: memref<1x8x32xf32, #tpu.memory_space<vmem>>, %arg16: memref<8x32xf32, #tpu.memory_space<vmem>>) attributes {dimension_semantics = [#tpu.dimension_semantics<parallel>, #tpu.dimension_semantics<parallel>], iteration_bounds = array<i64: 2, 1>, scalar_prefetch = 0 : i64, scratch_operands = 1 : i64, tpu.core_type = #tpu.core_type<tc>, window_params = [{transform_indices = @transform_0, window_bounds = array<i64: 1, 8, 32>}, {pipeline_mode = #tpu.pipeline_mode<synchronous>, transform_indices = @transform_1, window_bounds = array<i64: 1, 32>}, {pipeline_mode = #tpu.pipeline_mode<synchronous>, transform_indices = @transform_2, window_bounds = array<i64: 1, 32>}, {pipeline_mode = #tpu.pipeline_mode<synchronous>, transform_indices = @transform_3, window_bounds = array<i64: 1, 32, 32>}, {pipeline_mode = #tpu.pipeline_mode<synchronous>, transform_indices = @transform_4, window_bounds = array<i64: 1, 32, 64>}, {pipeline_mode = #tpu.pipeline_mode<synchronous>, transform_indices = @transform_5, window_bounds = array<i64: 4, 8, 32>}, {pipeline_mode = #tpu.pipeline_mode<synchronous>, transform_indices = @transform_6, window_bounds = array<i64: 1, 32>}, {pipeline_mode = #tpu.pipeline_mode<synchronous>, transform_indices = @transform_7, window_bounds = array<i64: 1, 32>}, {pipeline_mode = #tpu.pipeline_mode<synchronous>, transform_indices = @transform_8, window_bounds = array<i64: 1, 32>}, {pipeline_mode = #tpu.pipeline_mode<synchronous>, transform_indices = @transform_9, window_bounds = array<i64: 32, 128>}, {pipeline_mode = #tpu.pipeline_mode<synchronous>, transform_indices = @transform_10, window_bounds = array<i64: 1, 128>}, {pipeline_mode = #tpu.pipeline_mode<synchronous>, transform_indices = @transform_11, window_bounds = array<i64: 128, 32>}, {pipeline_mode = #tpu.pipeline_mode<synchronous>, transform_indices = @transform_12, window_bounds = array<i64: 1, 32>}, {transform_indices = @transform_13, window_bounds = array<i64: 1, 8, 32>}]} {
    %c8_i32 = arith.constant 8 : i32
    %0 = arith.muli %arg1, %c8_i32 : i32
    %1 = tpu.assume_multiple %0, 8 : i32
    %c0 = arith.constant 0 : index
    %c0_0 = arith.constant 0 : index
    %c0_1 = arith.constant 0 : index
    %2 = vector.load %arg2[%c0, %c0_0, %c0_1] : memref<1x8x32xf32, #tpu.memory_space<vmem>>, vector<1x8x32xf32>
    %3 = vector.shape_cast %2 : vector<1x8x32xf32> to vector<8x32xf32>
    %c0_2 = arith.constant 0 : index
    %c0_3 = arith.constant 0 : index
    %4 = vector.load %arg3[%c0_2, %c0_3] : memref<1x32xf32, #tpu.memory_space<vmem>>, vector<1x32xf32>
    %5 = vector.shape_cast %4 : vector<1x32xf32> to vector<32xf32>
    %c0_4 = arith.constant 0 : index
    %c0_5 = arith.constant 0 : index
    %6 = vector.load %arg4[%c0_4, %c0_5] : memref<1x32xf32, #tpu.memory_space<vmem>>, vector<1x32xf32>
    %7 = vector.shape_cast %6 : vector<1x32xf32> to vector<32xf32>
    %cst = arith.constant dense<0.000000e+00> : vector<8xf32>
    %8 = vector.multi_reduction <add>, %3, %cst [1] : vector<8x32xf32> to vector<8xf32>
    %9 = vector.shape_cast %8 : vector<8xf32> to vector<8x1xf32>
    %cst_6 = arith.constant 3.200000e+01 : f32
    %10 = vector.broadcast %cst_6 : f32 to vector<8x1xf32>
    %11 = arith.divf %9, %10 : vector<8x1xf32>
    %12 = vector.broadcast %11 : vector<8x1xf32> to vector<8x32xf32>
    %13 = arith.subf %3, %12 : vector<8x32xf32>
    %14 = arith.mulf %13, %13 : vector<8x32xf32>
    %cst_7 = arith.constant dense<0.000000e+00> : vector<8xf32>
    %15 = vector.multi_reduction <add>, %14, %cst_7 [1] : vector<8x32xf32> to vector<8xf32>
    %16 = vector.shape_cast %15 : vector<8xf32> to vector<8x1xf32>
    %cst_8 = arith.constant 3.200000e+01 : f32
    %17 = vector.broadcast %cst_8 : f32 to vector<8x1xf32>
    %18 = arith.divf %16, %17 : vector<8x1xf32>
    %19 = vector.broadcast %11 : vector<8x1xf32> to vector<8x32xf32>
    %20 = arith.subf %3, %19 : vector<8x32xf32>
    %cst_9 = arith.constant 9.99999974E-6 : f32
    %21 = vector.broadcast %cst_9 : f32 to vector<8x1xf32>
    %22 = arith.addf %18, %21 : vector<8x1xf32>
    %23 = math.rsqrt %22 : vector<8x1xf32>
    %24 = vector.broadcast %23 : vector<8x1xf32> to vector<8x32xf32>
    %25 = arith.mulf %20, %24 : vector<8x32xf32>
    %26 = vector.shape_cast %5 : vector<32xf32> to vector<1x32xf32>
    %27 = vector.broadcast %26 : vector<1x32xf32> to vector<8x32xf32>
    %28 = arith.mulf %25, %27 : vector<8x32xf32>
    %29 = vector.shape_cast %7 : vector<32xf32> to vector<1x32xf32>
    %30 = vector.broadcast %29 : vector<1x32xf32> to vector<8x32xf32>
    %31 = arith.addf %28, %30 : vector<8x32xf32>
    %32 = arith.truncf %31 : vector<8x32xf32> to vector<8x32xbf16>
    %c0_10 = arith.constant 0 : index
    %33 = arith.index_cast %1 : i32 to index
    %c0_11 = arith.constant 0 : index
    %34 = vector.load %arg2[%c0_10, %33, %c0_11] : memref<1x8x32xf32, #tpu.memory_space<vmem>>, vector<1x8x32xf32>
    %35 = vector.shape_cast %34 : vector<1x8x32xf32> to vector<8x32xf32>
    %c0_12 = arith.constant 0 : index
    %c0_13 = arith.constant 0 : index
    %36 = vector.load %arg3[%c0_12, %c0_13] : memref<1x32xf32, #tpu.memory_space<vmem>>, vector<1x32xf32>
    %37 = vector.shape_cast %36 : vector<1x32xf32> to vector<32xf32>
    %c0_14 = arith.constant 0 : index
    %c0_15 = arith.constant 0 : index
    %38 = vector.load %arg4[%c0_14, %c0_15] : memref<1x32xf32, #tpu.memory_space<vmem>>, vector<1x32xf32>
    %39 = vector.shape_cast %38 : vector<1x32xf32> to vector<32xf32>
    %cst_16 = arith.constant dense<0.000000e+00> : vector<8xf32>
    %40 = vector.multi_reduction <add>, %35, %cst_16 [1] : vector<8x32xf32> to vector<8xf32>
    %41 = vector.shape_cast %40 : vector<8xf32> to vector<8x1xf32>
    %cst_17 = arith.constant 3.200000e+01 : f32
    %42 = vector.broadcast %cst_17 : f32 to vector<8x1xf32>
    %43 = arith.divf %41, %42 : vector<8x1xf32>
    %44 = vector.broadcast %43 : vector<8x1xf32> to vector<8x32xf32>
    %45 = arith.subf %35, %44 : vector<8x32xf32>
    %46 = arith.mulf %45, %45 : vector<8x32xf32>
    %cst_18 = arith.constant dense<0.000000e+00> : vector<8xf32>
    %47 = vector.multi_reduction <add>, %46, %cst_18 [1] : vector<8x32xf32> to vector<8xf32>
    %48 = vector.shape_cast %47 : vector<8xf32> to vector<8x1xf32>
    %cst_19 = arith.constant 3.200000e+01 : f32
    %49 = vector.broadcast %cst_19 : f32 to vector<8x1xf32>
    %50 = arith.divf %48, %49 : vector<8x1xf32>
    %51 = vector.broadcast %43 : vector<8x1xf32> to vector<8x32xf32>
    %52 = arith.subf %35, %51 : vector<8x32xf32>
    %cst_20 = arith.constant 9.99999974E-6 : f32
    %53 = vector.broadcast %cst_20 : f32 to vector<8x1xf32>
    %54 = arith.addf %50, %53 : vector<8x1xf32>
    %55 = math.rsqrt %54 : vector<8x1xf32>
    %56 = vector.broadcast %55 : vector<8x1xf32> to vector<8x32xf32>
    %57 = arith.mulf %52, %56 : vector<8x32xf32>
    %58 = vector.shape_cast %37 : vector<32xf32> to vector<1x32xf32>
    %59 = vector.broadcast %58 : vector<1x32xf32> to vector<8x32xf32>
    %60 = arith.mulf %57, %59 : vector<8x32xf32>
    %61 = vector.shape_cast %39 : vector<32xf32> to vector<1x32xf32>
    %62 = vector.broadcast %61 : vector<1x32xf32> to vector<8x32xf32>
    %63 = arith.addf %60, %62 : vector<8x32xf32>
    %64 = arith.truncf %63 : vector<8x32xf32> to vector<8x32xbf16>
    %cst_21 = arith.constant 0.000000e+00 : f32
    %65 = vector.broadcast %cst_21 : f32 to vector<8x32xf32>
    %c0_22 = arith.constant 0 : index
    %c0_23 = arith.constant 0 : index
    %66 = vector.load %arg16[%c0_22, %c0_23] : memref<8x32xf32, #tpu.memory_space<vmem>>, vector<8x32xf32>
    tpu.vector_store %arg16[%c0_22, %c0_23], %65 {strides = array<i32>} : memref<8x32xf32, #tpu.memory_space<vmem>>, vector<8x32xf32>,
    %c0_i32 = arith.constant 0 : i32
    %c1_i32 = arith.constant 1 : i32
    %67 = arith.muli %c0_i32, %c1_i32 : i32
    %c0_i32_24 = arith.constant 0 : i32
    %68 = arith.addi %c0_i32_24, %67 : i32
    %69 = arith.index_cast %68 : i32 to index
    %c0_25 = arith.constant 0 : index
    %c0_26 = arith.constant 0 : index
    %70 = vector.load %arg5[%69, %c0_25, %c0_26] : memref<1x32x32xbf16, #tpu.memory_space<vmem>>, vector<1x32x32xbf16>
    %71 = vector.shape_cast %70 : vector<1x32x32xbf16> to vector<32x32xbf16>
    %cst_27 = arith.constant dense<0.000000e+00> : vector<8x32xf32>
    %72 = tpu.matmul %64, %71, %cst_27 {dimension_numbers = #tpu.dot_dimension_numbers<[1], [0], [0], [1], [0, 0, 1, 1], [], []>} : vector<8x32xbf16>, vector<32x32xbf16>, vector<8x32xf32> -> vector<8x32xf32>
    %73 = arith.index_cast %68 : i32 to index
    %c0_28 = arith.constant 0 : index
    %c0_29 = arith.constant 0 : index
    %74 = vector.load %arg6[%73, %c0_28, %c0_29] : memref<1x32x64xbf16, #tpu.memory_space<vmem>>, vector<1x32x64xbf16>
    %75 = vector.shape_cast %74 : vector<1x32x64xbf16> to vector<32x64xbf16>
    %cst_30 = arith.constant dense<0.000000e+00> : vector<8x64xf32>
    %76 = tpu.matmul %32, %75, %cst_30 {dimension_numbers = #tpu.dot_dimension_numbers<[1], [0], [0], [1], [0, 0, 1, 1], [], []>} : vector<8x32xbf16>, vector<32x64xbf16>, vector<8x64xf32> -> vector<8x64xf32>
    %77 = vector.extract_strided_slice %72 {offsets = [0, 0], sizes = [8, 8], strides = [1, 1]} : vector<8x32xf32> to vector<8x8xf32>
    %78 = arith.truncf %77 : vector<8x8xf32> to vector<8x8xbf16>
    %79 = vector.extract_strided_slice %76 {offsets = [0, 0], sizes = [8, 8], strides = [1, 1]} : vector<8x64xf32> to vector<8x8xf32>
    %80 = arith.truncf %79 : vector<8x8xf32> to vector<8x8xbf16>
    %81 = vector.extract_strided_slice %76 {offsets = [0, 32], sizes = [8, 8], strides = [1, 1]} : vector<8x64xf32> to vector<8x8xf32>
    %82 = arith.truncf %81 : vector<8x8xf32> to vector<8x8xbf16>
    %cst_31 = arith.constant dense<0.000000e+00> : vector<8x8xf32>
    %83 = tpu.matmul %78, %80, %cst_31 {dimension_numbers = #tpu.dot_dimension_numbers<[1], [1], [0], [0], [0, 0, 1, 0], [], []>} : vector<8x8xbf16>, vector<8x8xbf16>, vector<8x8xf32> -> vector<8x8xf32>
    %cst_32 = arith.constant dense<0xFF800000> : vector<8xf32>
    %84 = vector.multi_reduction <maximumf>, %83, %cst_32 [1] : vector<8x8xf32> to vector<8xf32>
    %85 = vector.shape_cast %84 : vector<8xf32> to vector<8x1xf32>
    %86 = vector.broadcast %85 : vector<8x1xf32> to vector<8x8xf32>
    %87 = arith.subf %83, %86 : vector<8x8xf32>
    %88 = math.exp %87 : vector<8x8xf32>
    %cst_33 = arith.constant dense<0.000000e+00> : vector<8xf32>
    %89 = vector.multi_reduction <add>, %88, %cst_33 [1] : vector<8x8xf32> to vector<8xf32>
    %90 = vector.shape_cast %89 : vector<8xf32> to vector<8x1xf32>
    %91 = tpu.reciprocal %90 {approx = true} : vector<8x1xf32> -> vector<8x1xf32>
    %92 = vector.broadcast %91 : vector<8x1xf32> to vector<8x8xf32>
    %93 = arith.mulf %88, %92 : vector<8x8xf32>
    %94 = arith.truncf %93 : vector<8x8xf32> to vector<8x8xbf16>
    %cst_34 = arith.constant dense<0.000000e+00> : vector<8x8xf32>
    %95 = tpu.matmul %94, %82, %cst_34 {dimension_numbers = #tpu.dot_dimension_numbers<[1], [0], [0], [1], [0, 0, 1, 1], [], []>} : vector<8x8xbf16>, vector<8x8xbf16>, vector<8x8xf32> -> vector<8x8xf32>
    %c0_35 = arith.constant 0 : index
    %c0_36 = arith.constant 0 : index
    %96 = vector.load %arg16[%c0_35, %c0_36] : memref<8x32xf32, #tpu.memory_space<vmem>>, vector<8x32xf32>
    %97 = arith.truncf %95 : vector<8x8xf32> to vector<8x8xbf16>
    %c4_i32 = arith.constant 4 : i32
    %98 = arith.muli %68, %c4_i32 : i32
    %c0_i32_37 = arith.constant 0 : i32
    %99 = arith.addi %98, %c0_i32_37 : i32
    %100 = arith.index_cast %99 : i32 to index
    %c0_38 = arith.constant 0 : index
    %c0_39 = arith.constant 0 : index
    %101 = vector.load %arg7[%100, %c0_38, %c0_39] : memref<4x8x32xbf16, #tpu.memory_space<vmem>>, vector<1x8x32xbf16>
    %102 = vector.shape_cast %101 : vector<1x8x32xbf16> to vector<8x32xbf16>
    %cst_40 = arith.constant dense<0.000000e+00> : vector<8x32xf32>
    %103 = tpu.matmul %97, %102, %cst_40 {dimension_numbers = #tpu.dot_dimension_numbers<[1], [0], [0], [1], [0, 0, 1, 1], [], []>} : vector<8x8xbf16>, vector<8x32xbf16>, vector<8x32xf32> -> vector<8x32xf32>
    %104 = arith.addf %96, %103 : vector<8x32xf32>
    %c0_41 = arith.constant 0 : index
    %c0_42 = arith.constant 0 : index
    %105 = vector.load %arg16[%c0_41, %c0_42] : memref<8x32xf32, #tpu.memory_space<vmem>>, vector<8x32xf32>
    tpu.vector_store %arg16[%c0_41, %c0_42], %104 {strides = array<i32>} : memref<8x32xf32, #tpu.memory_space<vmem>>, vector<8x32xf32>,
    %106 = vector.extract_strided_slice %72 {offsets = [0, 8], sizes = [8, 8], strides = [1, 1]} : vector<8x32xf32> to vector<8x8xf32>
    %107 = arith.truncf %106 : vector<8x8xf32> to vector<8x8xbf16>
    %108 = vector.extract_strided_slice %76 {offsets = [0, 8], sizes = [8, 8], strides = [1, 1]} : vector<8x64xf32> to vector<8x8xf32>
    %109 = arith.truncf %108 : vector<8x8xf32> to vector<8x8xbf16>
    %110 = vector.extract_strided_slice %76 {offsets = [0, 40], sizes = [8, 8], strides = [1, 1]} : vector<8x64xf32> to vector<8x8xf32>
    %111 = arith.truncf %110 : vector<8x8xf32> to vector<8x8xbf16>
    %cst_43 = arith.constant dense<0.000000e+00> : vector<8x8xf32>
    %112 = tpu.matmul %107, %109, %cst_43 {dimension_numbers = #tpu.dot_dimension_numbers<[1], [1], [0], [0], [0, 0, 1, 0], [], []>} : vector<8x8xbf16>, vector<8x8xbf16>, vector<8x8xf32> -> vector<8x8xf32>
    %cst_44 = arith.constant dense<0xFF800000> : vector<8xf32>
    %113 = vector.multi_reduction <maximumf>, %112, %cst_44 [1] : vector<8x8xf32> to vector<8xf32>
    %114 = vector.shape_cast %113 : vector<8xf32> to vector<8x1xf32>
    %115 = vector.broadcast %114 : vector<8x1xf32> to vector<8x8xf32>
    %116 = arith.subf %112, %115 : vector<8x8xf32>
    %117 = math.exp %116 : vector<8x8xf32>
    %cst_45 = arith.constant dense<0.000000e+00> : vector<8xf32>
    %118 = vector.multi_reduction <add>, %117, %cst_45 [1] : vector<8x8xf32> to vector<8xf32>
    %119 = vector.shape_cast %118 : vector<8xf32> to vector<8x1xf32>
    %120 = tpu.reciprocal %119 {approx = true} : vector<8x1xf32> -> vector<8x1xf32>
    %121 = vector.broadcast %120 : vector<8x1xf32> to vector<8x8xf32>
    %122 = arith.mulf %117, %121 : vector<8x8xf32>
    %123 = arith.truncf %122 : vector<8x8xf32> to vector<8x8xbf16>
    %cst_46 = arith.constant dense<0.000000e+00> : vector<8x8xf32>
    %124 = tpu.matmul %123, %111, %cst_46 {dimension_numbers = #tpu.dot_dimension_numbers<[1], [0], [0], [1], [0, 0, 1, 1], [], []>} : vector<8x8xbf16>, vector<8x8xbf16>, vector<8x8xf32> -> vector<8x8xf32>
    %c0_47 = arith.constant 0 : index
    %c0_48 = arith.constant 0 : index
    %125 = vector.load %arg16[%c0_47, %c0_48] : memref<8x32xf32, #tpu.memory_space<vmem>>, vector<8x32xf32>
    %126 = arith.truncf %124 : vector<8x8xf32> to vector<8x8xbf16>
    %c4_i32_49 = arith.constant 4 : i32
    %127 = arith.muli %68, %c4_i32_49 : i32
    %c1_i32_50 = arith.constant 1 : i32
    %128 = arith.addi %127, %c1_i32_50 : i32
    %129 = arith.index_cast %128 : i32 to index
    %c0_51 = arith.constant 0 : index
    %c0_52 = arith.constant 0 : index
    %130 = vector.load %arg7[%129, %c0_51, %c0_52] : memref<4x8x32xbf16, #tpu.memory_space<vmem>>, vector<1x8x32xbf16>
    %131 = vector.shape_cast %130 : vector<1x8x32xbf16> to vector<8x32xbf16>
    %cst_53 = arith.constant dense<0.000000e+00> : vector<8x32xf32>
    %132 = tpu.matmul %126, %131, %cst_53 {dimension_numbers = #tpu.dot_dimension_numbers<[1], [0], [0], [1], [0, 0, 1, 1], [], []>} : vector<8x8xbf16>, vector<8x32xbf16>, vector<8x32xf32> -> vector<8x32xf32>
    %133 = arith.addf %125, %132 : vector<8x32xf32>
    %c0_54 = arith.constant 0 : index
    %c0_55 = arith.constant 0 : index
    %134 = vector.load %arg16[%c0_54, %c0_55] : memref<8x32xf32, #tpu.memory_space<vmem>>, vector<8x32xf32>
    tpu.vector_store %arg16[%c0_54, %c0_55], %133 {strides = array<i32>} : memref<8x32xf32, #tpu.memory_space<vmem>>, vector<8x32xf32>,
    %135 = vector.extract_strided_slice %72 {offsets = [0, 16], sizes = [8, 8], strides = [1, 1]} : vector<8x32xf32> to vector<8x8xf32>
    %136 = arith.truncf %135 : vector<8x8xf32> to vector<8x8xbf16>
    %137 = vector.extract_strided_slice %76 {offsets = [0, 16], sizes = [8, 8], strides = [1, 1]} : vector<8x64xf32> to vector<8x8xf32>
    %138 = arith.truncf %137 : vector<8x8xf32> to vector<8x8xbf16>
    %139 = vector.extract_strided_slice %76 {offsets = [0, 48], sizes = [8, 8], strides = [1, 1]} : vector<8x64xf32> to vector<8x8xf32>
    %140 = arith.truncf %139 : vector<8x8xf32> to vector<8x8xbf16>
    %cst_56 = arith.constant dense<0.000000e+00> : vector<8x8xf32>
    %141 = tpu.matmul %136, %138, %cst_56 {dimension_numbers = #tpu.dot_dimension_numbers<[1], [1], [0], [0], [0, 0, 1, 0], [], []>} : vector<8x8xbf16>, vector<8x8xbf16>, vector<8x8xf32> -> vector<8x8xf32>
    %cst_57 = arith.constant dense<0xFF800000> : vector<8xf32>
    %142 = vector.multi_reduction <maximumf>, %141, %cst_57 [1] : vector<8x8xf32> to vector<8xf32>
    %143 = vector.shape_cast %142 : vector<8xf32> to vector<8x1xf32>
    %144 = vector.broadcast %143 : vector<8x1xf32> to vector<8x8xf32>
    %145 = arith.subf %141, %144 : vector<8x8xf32>
    %146 = math.exp %145 : vector<8x8xf32>
    %cst_58 = arith.constant dense<0.000000e+00> : vector<8xf32>
    %147 = vector.multi_reduction <add>, %146, %cst_58 [1] : vector<8x8xf32> to vector<8xf32>
    %148 = vector.shape_cast %147 : vector<8xf32> to vector<8x1xf32>
    %149 = tpu.reciprocal %148 {approx = true} : vector<8x1xf32> -> vector<8x1xf32>
    %150 = vector.broadcast %149 : vector<8x1xf32> to vector<8x8xf32>
    %151 = arith.mulf %146, %150 : vector<8x8xf32>
    %152 = arith.truncf %151 : vector<8x8xf32> to vector<8x8xbf16>
    %cst_59 = arith.constant dense<0.000000e+00> : vector<8x8xf32>
    %153 = tpu.matmul %152, %140, %cst_59 {dimension_numbers = #tpu.dot_dimension_numbers<[1], [0], [0], [1], [0, 0, 1, 1], [], []>} : vector<8x8xbf16>, vector<8x8xbf16>, vector<8x8xf32> -> vector<8x8xf32>
    %c0_60 = arith.constant 0 : index
    %c0_61 = arith.constant 0 : index
    %154 = vector.load %arg16[%c0_60, %c0_61] : memref<8x32xf32, #tpu.memory_space<vmem>>, vector<8x32xf32>
    %155 = arith.truncf %153 : vector<8x8xf32> to vector<8x8xbf16>
    %c4_i32_62 = arith.constant 4 : i32
    %156 = arith.muli %68, %c4_i32_62 : i32
    %c2_i32 = arith.constant 2 : i32
    %157 = arith.addi %156, %c2_i32 : i32
    %158 = arith.index_cast %157 : i32 to index
    %c0_63 = arith.constant 0 : index
    %c0_64 = arith.constant 0 : index
    %159 = vector.load %arg7[%158, %c0_63, %c0_64] : memref<4x8x32xbf16, #tpu.memory_space<vmem>>, vector<1x8x32xbf16>
    %160 = vector.shape_cast %159 : vector<1x8x32xbf16> to vector<8x32xbf16>
    %cst_65 = arith.constant dense<0.000000e+00> : vector<8x32xf32>
    %161 = tpu.matmul %155, %160, %cst_65 {dimension_numbers = #tpu.dot_dimension_numbers<[1], [0], [0], [1], [0, 0, 1, 1], [], []>} : vector<8x8xbf16>, vector<8x32xbf16>, vector<8x32xf32> -> vector<8x32xf32>
    %162 = arith.addf %154, %161 : vector<8x32xf32>
    %c0_66 = arith.constant 0 : index
    %c0_67 = arith.constant 0 : index
    %163 = vector.load %arg16[%c0_66, %c0_67] : memref<8x32xf32, #tpu.memory_space<vmem>>, vector<8x32xf32>
    tpu.vector_store %arg16[%c0_66, %c0_67], %162 {strides = array<i32>} : memref<8x32xf32, #tpu.memory_space<vmem>>, vector<8x32xf32>,
    %164 = vector.extract_strided_slice %72 {offsets = [0, 24], sizes = [8, 8], strides = [1, 1]} : vector<8x32xf32> to vector<8x8xf32>
    %165 = arith.truncf %164 : vector<8x8xf32> to vector<8x8xbf16>
    %166 = vector.extract_strided_slice %76 {offsets = [0, 24], sizes = [8, 8], strides = [1, 1]} : vector<8x64xf32> to vector<8x8xf32>
    %167 = arith.truncf %166 : vector<8x8xf32> to vector<8x8xbf16>
    %168 = vector.extract_strided_slice %76 {offsets = [0, 56], sizes = [8, 8], strides = [1, 1]} : vector<8x64xf32> to vector<8x8xf32>
    %169 = arith.truncf %168 : vector<8x8xf32> to vector<8x8xbf16>
    %cst_68 = arith.constant dense<0.000000e+00> : vector<8x8xf32>
    %170 = tpu.matmul %165, %167, %cst_68 {dimension_numbers = #tpu.dot_dimension_numbers<[1], [1], [0], [0], [0, 0, 1, 0], [], []>} : vector<8x8xbf16>, vector<8x8xbf16>, vector<8x8xf32> -> vector<8x8xf32>
    %cst_69 = arith.constant dense<0xFF800000> : vector<8xf32>
    %171 = vector.multi_reduction <maximumf>, %170, %cst_69 [1] : vector<8x8xf32> to vector<8xf32>
    %172 = vector.shape_cast %171 : vector<8xf32> to vector<8x1xf32>
    %173 = vector.broadcast %172 : vector<8x1xf32> to vector<8x8xf32>
    %174 = arith.subf %170, %173 : vector<8x8xf32>
    %175 = math.exp %174 : vector<8x8xf32>
    %cst_70 = arith.constant dense<0.000000e+00> : vector<8xf32>
    %176 = vector.multi_reduction <add>, %175, %cst_70 [1] : vector<8x8xf32> to vector<8xf32>
    %177 = vector.shape_cast %176 : vector<8xf32> to vector<8x1xf32>
    %178 = tpu.reciprocal %177 {approx = true} : vector<8x1xf32> -> vector<8x1xf32>
    %179 = vector.broadcast %178 : vector<8x1xf32> to vector<8x8xf32>
    %180 = arith.mulf %175, %179 : vector<8x8xf32>
    %181 = arith.truncf %180 : vector<8x8xf32> to vector<8x8xbf16>
    %cst_71 = arith.constant dense<0.000000e+00> : vector<8x8xf32>
    %182 = tpu.matmul %181, %169, %cst_71 {dimension_numbers = #tpu.dot_dimension_numbers<[1], [0], [0], [1], [0, 0, 1, 1], [], []>} : vector<8x8xbf16>, vector<8x8xbf16>, vector<8x8xf32> -> vector<8x8xf32>
    %c0_72 = arith.constant 0 : index
    %c0_73 = arith.constant 0 : index
    %183 = vector.load %arg16[%c0_72, %c0_73] : memref<8x32xf32, #tpu.memory_space<vmem>>, vector<8x32xf32>
    %184 = arith.truncf %182 : vector<8x8xf32> to vector<8x8xbf16>
    %c4_i32_74 = arith.constant 4 : i32
    %185 = arith.muli %68, %c4_i32_74 : i32
    %c3_i32 = arith.constant 3 : i32
    %186 = arith.addi %185, %c3_i32 : i32
    %187 = arith.index_cast %186 : i32 to index
    %c0_75 = arith.constant 0 : index
    %c0_76 = arith.constant 0 : index
    %188 = vector.load %arg7[%187, %c0_75, %c0_76] : memref<4x8x32xbf16, #tpu.memory_space<vmem>>, vector<1x8x32xbf16>
    %189 = vector.shape_cast %188 : vector<1x8x32xbf16> to vector<8x32xbf16>
    %cst_77 = arith.constant dense<0.000000e+00> : vector<8x32xf32>
    %190 = tpu.matmul %184, %189, %cst_77 {dimension_numbers = #tpu.dot_dimension_numbers<[1], [0], [0], [1], [0, 0, 1, 1], [], []>} : vector<8x8xbf16>, vector<8x32xbf16>, vector<8x32xf32> -> vector<8x32xf32>
    %191 = arith.addf %183, %190 : vector<8x32xf32>
    %c0_78 = arith.constant 0 : index
    %c0_79 = arith.constant 0 : index
    %192 = vector.load %arg16[%c0_78, %c0_79] : memref<8x32xf32, #tpu.memory_space<vmem>>, vector<8x32xf32>
    tpu.vector_store %arg16[%c0_78, %c0_79], %191 {strides = array<i32>} : memref<8x32xf32, #tpu.memory_space<vmem>>, vector<8x32xf32>,
    %c1_i32_80 = arith.constant 1 : i32
    %c0_81 = arith.constant 0 : index
    %c0_82 = arith.constant 0 : index
    %193 = vector.load %arg16[%c0_81, %c0_82] : memref<8x32xf32, #tpu.memory_space<vmem>>, vector<8x32xf32>
    %194 = arith.addf %35, %193 : vector<8x32xf32>
    %c0_83 = arith.constant 0 : index
    %c0_84 = arith.constant 0 : index
    %195 = vector.load %arg8[%c0_83, %c0_84] : memref<1x32xf32, #tpu.memory_space<vmem>>, vector<1x32xf32>
    %196 = vector.shape_cast %195 : vector<1x32xf32> to vector<32xf32>
    %197 = vector.shape_cast %196 : vector<32xf32> to vector<1x32xf32>
    %198 = vector.broadcast %197 : vector<1x32xf32> to vector<8x32xf32>
    %199 = arith.addf %194, %198 : vector<8x32xf32>
    %c0_85 = arith.constant 0 : index
    %c0_86 = arith.constant 0 : index
    %200 = vector.load %arg9[%c0_85, %c0_86] : memref<1x32xf32, #tpu.memory_space<vmem>>, vector<1x32xf32>
    %201 = vector.shape_cast %200 : vector<1x32xf32> to vector<32xf32>
    %c0_87 = arith.constant 0 : index
    %c0_88 = arith.constant 0 : index
    %202 = vector.load %arg10[%c0_87, %c0_88] : memref<1x32xf32, #tpu.memory_space<vmem>>, vector<1x32xf32>
    %203 = vector.shape_cast %202 : vector<1x32xf32> to vector<32xf32>
    %cst_89 = arith.constant dense<0.000000e+00> : vector<8xf32>
    %204 = vector.multi_reduction <add>, %199, %cst_89 [1] : vector<8x32xf32> to vector<8xf32>
    %205 = vector.shape_cast %204 : vector<8xf32> to vector<8x1xf32>
    %cst_90 = arith.constant 3.200000e+01 : f32
    %206 = vector.broadcast %cst_90 : f32 to vector<8x1xf32>
    %207 = arith.divf %205, %206 : vector<8x1xf32>
    %208 = vector.broadcast %207 : vector<8x1xf32> to vector<8x32xf32>
    %209 = arith.subf %199, %208 : vector<8x32xf32>
    %210 = arith.mulf %209, %209 : vector<8x32xf32>
    %cst_91 = arith.constant dense<0.000000e+00> : vector<8xf32>
    %211 = vector.multi_reduction <add>, %210, %cst_91 [1] : vector<8x32xf32> to vector<8xf32>
    %212 = vector.shape_cast %211 : vector<8xf32> to vector<8x1xf32>
    %cst_92 = arith.constant 3.200000e+01 : f32
    %213 = vector.broadcast %cst_92 : f32 to vector<8x1xf32>
    %214 = arith.divf %212, %213 : vector<8x1xf32>
    %215 = vector.broadcast %207 : vector<8x1xf32> to vector<8x32xf32>
    %216 = arith.subf %199, %215 : vector<8x32xf32>
    %cst_93 = arith.constant 9.99999974E-6 : f32
    %217 = vector.broadcast %cst_93 : f32 to vector<8x1xf32>
    %218 = arith.addf %214, %217 : vector<8x1xf32>
    %219 = math.rsqrt %218 : vector<8x1xf32>
    %220 = vector.broadcast %219 : vector<8x1xf32> to vector<8x32xf32>
    %221 = arith.mulf %216, %220 : vector<8x32xf32>
    %222 = vector.shape_cast %201 : vector<32xf32> to vector<1x32xf32>
    %223 = vector.broadcast %222 : vector<1x32xf32> to vector<8x32xf32>
    %224 = arith.mulf %221, %223 : vector<8x32xf32>
    %225 = vector.shape_cast %203 : vector<32xf32> to vector<1x32xf32>
    %226 = vector.broadcast %225 : vector<1x32xf32> to vector<8x32xf32>
    %227 = arith.addf %224, %226 : vector<8x32xf32>
    %228 = arith.truncf %227 : vector<8x32xf32> to vector<8x32xbf16>
    %c0_94 = arith.constant 0 : index
    %c0_95 = arith.constant 0 : index
    %229 = vector.load %arg11[%c0_94, %c0_95] : memref<32x128xbf16, #tpu.memory_space<vmem>>, vector<32x128xbf16>
    %cst_96 = arith.constant dense<0.000000e+00> : vector<8x128xf32>
    %230 = tpu.matmul %228, %229, %cst_96 {dimension_numbers = #tpu.dot_dimension_numbers<[1], [0], [0], [1], [0, 0, 1, 1], [], []>} : vector<8x32xbf16>, vector<32x128xbf16>, vector<8x128xf32> -> vector<8x128xf32>
    %c0_97 = arith.constant 0 : index
    %c0_98 = arith.constant 0 : index
    %231 = vector.load %arg12[%c0_97, %c0_98] : memref<1x128xf32, #tpu.memory_space<vmem>>, vector<1x128xf32>
    %232 = vector.shape_cast %231 : vector<1x128xf32> to vector<128xf32>
    %233 = vector.shape_cast %232 : vector<128xf32> to vector<1x128xf32>
    %234 = vector.broadcast %233 : vector<1x128xf32> to vector<8x128xf32>
    %235 = arith.addf %230, %234 : vector<8x128xf32>
    %cst_99 = arith.constant 5.000000e-01 : f32
    %236 = vector.broadcast %cst_99 : f32 to vector<8x128xf32>
    %237 = arith.mulf %236, %235 : vector<8x128xf32>
    %cst_100 = arith.constant 0.707106769 : f32
    %238 = vector.broadcast %cst_100 : f32 to vector<8x128xf32>
    %239 = arith.mulf %235, %238 : vector<8x128xf32>
    %240 = math.erf %239 : vector<8x128xf32>
    %cst_101 = arith.constant 1.000000e+00 : f32
    %241 = vector.broadcast %cst_101 : f32 to vector<8x128xf32>
    %242 = arith.addf %241, %240 : vector<8x128xf32>
    %243 = arith.mulf %237, %242 : vector<8x128xf32>
    %244 = arith.truncf %243 : vector<8x128xf32> to vector<8x128xbf16>
    %c0_102 = arith.constant 0 : index
    %c0_103 = arith.constant 0 : index
    %245 = vector.load %arg13[%c0_102, %c0_103] : memref<128x32xbf16, #tpu.memory_space<vmem>>, vector<128x32xbf16>
    %cst_104 = arith.constant dense<0.000000e+00> : vector<8x32xf32>
    %246 = tpu.matmul %244, %245, %cst_104 {dimension_numbers = #tpu.dot_dimension_numbers<[1], [0], [0], [1], [0, 0, 1, 1], [], []>} : vector<8x128xbf16>, vector<128x32xbf16>, vector<8x32xf32> -> vector<8x32xf32>
    %c0_105 = arith.constant 0 : index
    %c0_106 = arith.constant 0 : index
    %247 = vector.load %arg14[%c0_105, %c0_106] : memref<1x32xf32, #tpu.memory_space<vmem>>, vector<1x32xf32>
    %248 = vector.shape_cast %247 : vector<1x32xf32> to vector<32xf32>
    %249 = vector.shape_cast %248 : vector<32xf32> to vector<1x32xf32>
    %250 = vector.broadcast %249 : vector<1x32xf32> to vector<8x32xf32>
    %251 = arith.addf %246, %250 : vector<8x32xf32>
    %252 = arith.addf %199, %251 : vector<8x32xf32>
    %c0_107 = arith.constant 0 : index
    %c0_108 = arith.constant 0 : index
    %c0_109 = arith.constant 0 : index
    %253 = vector.load %arg15[%c0_107, %c0_108, %c0_109] : memref<1x8x32xf32, #tpu.memory_space<vmem>>, vector<1x8x32xf32>
    %254 = vector.shape_cast %253 : vector<1x8x32xf32> to vector<8x32xf32>
    %255 = vector.shape_cast %252 : vector<8x32xf32> to vector<1x8x32xf32>
    tpu.vector_store %arg15[%c0_107, %c0_108, %c0_109], %255 {strides = array<i32>} : memref<1x8x32xf32, #tpu.memory_space<vmem>>, vector<1x8x32xf32>,
    return
  }
  func.func @transform_0(%arg0: i32, %arg1: i32) -> (i32, i32, i32) {
    %c0_i32 = arith.constant 0 : i32
    %c0_i32_0 = arith.constant 0 : i32
    %c0_i32_1 = arith.constant 0 : i32
    return %arg0, %c0_i32, %c0_i32_0 : i32, i32, i32
  }
  func.func @transform_1(%arg0: i32, %arg1: i32) -> (i32, i32) {
    %c0_i32 = arith.constant 0 : i32
    %c0_i32_0 = arith.constant 0 : i32
    %c0_i32_1 = arith.constant 0 : i32
    return %c0_i32, %c0_i32_0 : i32, i32
  }
  func.func @transform_2(%arg0: i32, %arg1: i32) -> (i32, i32) {
    %c0_i32 = arith.constant 0 : i32
    %c0_i32_0 = arith.constant 0 : i32
    %c0_i32_1 = arith.constant 0 : i32
    return %c0_i32, %c0_i32_0 : i32, i32
  }
  func.func @transform_3(%arg0: i32, %arg1: i32) -> (i32, i32, i32) {
    %c0_i32 = arith.constant 0 : i32
    %c0_i32_0 = arith.constant 0 : i32
    %c0_i32_1 = arith.constant 0 : i32
    %c0_i32_2 = arith.constant 0 : i32
    return %c0_i32, %c0_i32_0, %c0_i32_1 : i32, i32, i32
  }
  func.func @transform_4(%arg0: i32, %arg1: i32) -> (i32, i32, i32) {
    %c0_i32 = arith.constant 0 : i32
    %c0_i32_0 = arith.constant 0 : i32
    %c0_i32_1 = arith.constant 0 : i32
    %c0_i32_2 = arith.constant 0 : i32
    return %c0_i32, %c0_i32_0, %c0_i32_1 : i32, i32, i32
  }
  func.func @transform_5(%arg0: i32, %arg1: i32) -> (i32, i32, i32) {
    %c0_i32 = arith.constant 0 : i32
    %c0_i32_0 = arith.constant 0 : i32
    %c0_i32_1 = arith.constant 0 : i32
    %c0_i32_2 = arith.constant 0 : i32
    return %c0_i32, %c0_i32_0, %c0_i32_1 : i32, i32, i32
  }
  func.func @transform_6(%arg0: i32, %arg1: i32) -> (i32, i32) {
    %c0_i32 = arith.constant 0 : i32
    %c0_i32_0 = arith.constant 0 : i32
    %c0_i32_1 = arith.constant 0 : i32
    return %c0_i32, %c0_i32_0 : i32, i32
  }
  func.func @transform_7(%arg0: i32, %arg1: i32) -> (i32, i32) {
    %c0_i32 = arith.constant 0 : i32
    %c0_i32_0 = arith.constant 0 : i32
    %c0_i32_1 = arith.constant 0 : i32
    return %c0_i32, %c0_i32_0 : i32, i32
  }
  func.func @transform_8(%arg0: i32, %arg1: i32) -> (i32, i32) {
    %c0_i32 = arith.constant 0 : i32
    %c0_i32_0 = arith.constant 0 : i32
    %c0_i32_1 = arith.constant 0 : i32
    return %c0_i32, %c0_i32_0 : i32, i32
  }
  func.func @transform_9(%arg0: i32, %arg1: i32) -> (i32, i32) {
    %c0_i32 = arith.constant 0 : i32
    %c0_i32_0 = arith.constant 0 : i32
    %c0_i32_1 = arith.constant 0 : i32
    return %c0_i32, %c0_i32_0 : i32, i32
  }
  func.func @transform_10(%arg0: i32, %arg1: i32) -> (i32, i32) {
    %c0_i32 = arith.constant 0 : i32
    %c0_i32_0 = arith.constant 0 : i32
    %c0_i32_1 = arith.constant 0 : i32
    return %c0_i32, %c0_i32_0 : i32, i32
  }
  func.func @transform_11(%arg0: i32, %arg1: i32) -> (i32, i32) {
    %c0_i32 = arith.constant 0 : i32
    %c0_i32_0 = arith.constant 0 : i32
    %c0_i32_1 = arith.constant 0 : i32
    return %c0_i32, %c0_i32_0 : i32, i32
  }
  func.func @transform_12(%arg0: i32, %arg1: i32) -> (i32, i32) {
    %c0_i32 = arith.constant 0 : i32
    %c0_i32_0 = arith.constant 0 : i32
    %c0_i32_1 = arith.constant 0 : i32
    return %c0_i32, %c0_i32_0 : i32, i32
  }
  func.func @transform_13(%arg0: i32, %arg1: i32) -> (i32, i32, i32) {
    %c0_i32 = arith.constant 0 : i32
    %c0_i32_0 = arith.constant 0 : i32
    return %arg0, %arg1, %c0_i32 : i32, i32, i32
  }
}

</mosaic_0001>

<bundles_post_ra>
// kernel: tpu_custom_call.1
= control target key start
LH: loop header
LB: loop body
LE: loop exit
PB: predicated region body
PF: predicated region fallthrough
CT: control target
= control target key end

     0   :  { %18 = vsyncpa [#allocation4], 0  ;;  %s2540_s0 = inlined_call_operand.vmem [shape: f32[2,8,32], index: 0, kind: input, shape index: {}]   ;;  %s2541_s1 = inlined_call_operand.vmem [shape: f32[1,32], index: 1, kind: input, shape index: {}]   ;;  %s2542_s2 = inlined_call_operand.vmem [shape: f32[1,32], index: 2, kind: input, shape index: {}]   ;;  %s2543_s3 = inlined_call_operand.vmem [shape: bf16[1,32,32], index: 3, kind: input, shape index: {}]   ;;  %s2544_s4 = inlined_call_operand.vmem [shape: bf16[1,32,64], index: 4, kind: input, shape index: {}]   ;;  %s2545_s5 = inlined_call_operand.vmem [shape: bf16[4,8,32], index: 5, kind: input, shape index: {}]   ;;  %s2546_s6 = inlined_call_operand.vmem [shape: f32[1,32], index: 6, kind: input, shape index: {}]   ;;  %s2547_s7 = inlined_call_operand.vmem [shape: f32[1,32], index: 7, kind: input, shape index: {}]   ;;  %s2548_s8 = inlined_call_operand.hbm [shape: f32[1,32], index: 8, kind: input, shape index: {}]   ;;  %s2549_s9 = inlined_call_operand.vmem [shape: bf16[32,128], index: 9, kind: input, shape index: {}]   ;;  %s2550_s10 = inlined_call_operand.hbm [shape: f32[1,128], index: 10, kind: input, shape index: {}]   ;;  %s2551_s11 = inlined_call_operand.vmem [shape: bf16[128,32], index: 11, kind: input, shape index: {}]   ;;  %s2552_s12 = inlined_call_operand.vmem [shape: f32[1,32], index: 12, kind: input, shape index: {}]   ;;  %s2553_s13 = inlined_call_operand.hbm [shape: f32[2,8,32], index: 13, kind: output, shape index: {}]  }
   0x1   :  { %19 = vsyncpa [#allocation7], 0 }
   0x2   :  { %20 = vsyncpa [#allocation5], 0 }
   0x3   :  { %22 = vsyncpa [#allocation5 + $0x1], 0  ;;  %s2184_s25 = smov 0   ;;  %s2186_s26 = smov 0  }
   0x4   :  { %s2188_s27 = smov 0   ;;  %s2190_s28 = smov 0  }
   0x5   :  { %s2192_s29 = smov 0   ;;  %s2194_s30 = smov 0  }
   0x6 LB: > { %2560 = sst [smem:[#allocation12_spill]] %s2088_s27  ;;  %s1629_s14 = sadd.s32 4294967295, %s2100_s30   ;;  %s2100_s30 = sphi %s2194_s30, %s28_s30   ;;  %s2096_s29 = sphi %s2192_s29, %s2575_s29   ;;  %s2092_s28 = sphi %s2190_s28, %s2574_s28   ;;  %s2088_s27 = sphi %s2188_s27, %s2573_s27   ;;  %s2084_s26 = sphi %s2186_s26, %s2577_s26   ;;  %s2080_s25 = sphi %s2184_s25, %s2576_s25  }
   0x7   : > { %2561 = sst [smem:[#allocation13_spill]] %s2096_s29  ;;  %s1630_s15 = sadd.s32 4294967294, %s2100_s30  }
   0x8   : > { %s40_s16 = sadd.s32 1, %s2096_s29  ;;  %s327_s17 = sadd.s32 1, %s2088_s27 }
   0x9   : > { %p42_p0 = scmp.ge.s32.totalorder %s40_s16, 2  ;;  %p337_p1 = scmp.ne.s32.totalorder %s2088_s27, %s2084_s26 }
   0xa   : > { %p338_p2 = scmp.eq.s32.totalorder %s1629_s14, 1  ;;  %p343_p3 = scmp.ne.s32.totalorder %s2084_s26, %s2080_s25 }
   0xb   : > { %s2579_s16 = smov (%p42_p0, %s40_s16), 0  ;;  %p344_p5 = scmp.eq.s32.totalorder %s1630_s15, 1 }
   0xc   : > { %2562 = sst [smem:[#allocation14_spill]] %s2579_s16  ;;  %p2224_p4 = por %p338_p2, %p337_p1 }
   0xd   : > { %s322_s19 = ssub.s32 %s2096_s29, %s2579_s16  ;;  %p1631_p6 = scmp.ge.s32.totalorder %s2100_s30, 1 }
   0xe   : > { %s2563_s18 = scalar_select %p2224_p4, 1, 0 }
   0xf   : > { %p325_p7 = scmp.eq.s32.totalorder %s322_s19, 0  ;;  %p2231_p8 = por %p344_p5, %p343_p3 }
  0x10   : > { %p351_p9 = scmp.lt.s32.totalorder %s2100_s30, 3  ;;  %p2243_p11 = scmp.eq.s32.totalorder %s1629_s14, 0 }
  0x11   : > { %s2564_s20 = scalar_select %p2231_p8, 1, 0 }
  0x12   : > { %s2237_s21 = scalar_select %p325_p7, %s2088_s27, %s327_s17  }
  0x13   : > { %p2239_p10 = pnand %p1631_p6, %p351_p9  ;;  %s2102_s24 = smov [#allocation3]  }
  0x14   : > { %2565 = sst [smem:[#allocation15_spill]] %s2237_s21  ;;  %s385_s15 = sshll.u32 %s2102_s24, 4  ;;  %s386_s15 = int_to_ptr.vmem [resolvable:$true] %s385_s15 }
  0x15   : > { %s2567_s23 = scalar_select %p2243_p11, 1, 0 }
  0x16   : > { %p1851_p12 = pneg %p2239_p10  ;;  %s2103_s19 = smov [#allocation6]  }
  0x17   : > { %s399_s16 = sshll.u32 %s2103_s19, 4  ;;  %s1975_s14 = scalar_lea.vmem %s386_s15, 16  ;;  %s400_s16 = int_to_ptr.vmem [resolvable:$true] %s399_s16 }
  0x18   : > { %p2251_p13 = pnand %p2243_p11, %p1851_p12  ;;  %p1976_p1 = scmp.ne.s32.totalorder %s386_s15, %s1975_s14 }
  0x19   : > { %s1982_s24 = scalar_lea.vmem %s386_s15, 32  ;;  %p1983_p5 = scmp.lt.s32.totalorder %s386_s15, %s386_s15 }
  0x1a   : > { %p1966_p0 = pneg %p2251_p13  ;;  %p1984_p6 = scmp.lt.s32.totalorder %s1982_s24, %s1975_s14 }
  0x1c   : > { %p1978_p2 = pnand %p1976_p1, %p1966_p0  ;;  %p1985_p7 = por %p1984_p6, %p1983_p5 }
  0x1e   : > { %p1979_p3 = pneg %p1978_p2 }
  0x20   : > { %p1986_p9 = pnand %p1985_p7, %p1979_p3 }
  0x22   : > { %1989 = shalt.err (!%p1986_p9)
}
  0x23   : > { %1854 = dma.hbm_to_vmem [thread:$0]  (!%p2251_p13), %s2548_s8, 16, %s386_s15, [#allocation4]  }
  0x24   : > { %s2001_s21 = scalar_lea.vmem %s400_s16, 16  ;;  %s2008_s27 = scalar_lea.vmem %s400_s16, 32 }
  0x25   : > { %p2002_p12 = scmp.ne.s32.totalorder %s400_s16, %s2001_s21  ;;  %p2009_p2 = scmp.lt.s32.totalorder %s400_s16, %s400_s16 }
  0x26   : > { %p2010_p4 = scmp.lt.s32.totalorder %s2008_s27, %s2001_s21 }
  0x27   : > { %p2004_p8 = pnand %p2002_p12, %p1966_p0 }
  0x28   : > { %p2011_p11 = por %p2010_p4, %p2009_p2 }
  0x29   : > { %p2005_p1 = pneg %p2004_p8 }
  0x2b   : > { %p2012_p5 = pnand %p2011_p11, %p2005_p1 }
  0x2d   : > { %2015 = shalt.err (!%p2012_p5)
}
  0x2e   : > { %1857 = dma.hbm_to_vmem [thread:$0]  (!%p2251_p13), %s2550_s10, 16, %s400_s16, [#allocation7]  }
  0x2f   : > { %425 = sbr.rel (%p2239_p10) target bundleno = 3775 (0xebf), region = 72  ;;  %p2569_p3 = scmp.ne.s32.totalorder (!%p2239_p10), %s2567_s23, 0 }
  0x34   : > { %2067 = dma.done.wait (%p2569_p3), [#allocation4], 16  }
  0x35   : > { %2069 = vsyncadd (%p2569_p3), [#allocation4], 4294967280 }
  0x36   : > { %2071 = dma.done.wait (%p2569_p3), [#allocation7], 16  }
  0x37   : > { %2073 = vsyncadd (%p2569_p3), [#allocation7], 4294967280  ;;  %p472_p4 = scmp.lt.s32.totalorder %s2092_s28, 1  ;;  %vm481_vm0 = vcmask 261120   ;;  %v1926_v12 = vld [vmem:[%s2543_s3 + $0x8] sm:$0xff]   ;;  %v2104_v13 = vmov 0.0  }
  0x38   : > { %1725 = vmatprep.subr.bf16.mxu0 %v2104_v13  ;;  %529 = vst.msk [vmem:[#allocation2] sm:$0xff] %vm481_vm0, %v2104_v13  ;;  %vm2105_vm1 = vmmov 0   ;;  %v1927_v14 = vld [vmem:[%s2543_s3] sm:$0xff]   ;;  %1747 = vmatprep.subr.bf16.mxu1 %v2104_v13  ;;  %v1928_v29 = vld [vmem:[%s2544_s4 + $0x8] sm:$0xff]   ;;  %vm650_vm2 = vcmask 64512   ;;  %s2106_s15 = smov 96  }
  0x39   : > { %s473_s27 = scalar_select %p472_p4, %s2092_s28, 1  ;;  %1729 = vmatprep.mubr.msk.bf16.mxu0 %vm2105_vm1, %v2104_v13  ;;  %1726 = vmatpush3.bf16.msra.mxu0 %v1926_v12  ;;  %v1640_v22 = vld [vmem:[%s2541_s1] ss:$0 sm:$0xff]  ;;  %vm715_vm3 = vcmask 1043456  }
  0x3a   : > { %1727 = vmatprep.subr.bf16.mxu0 %v2104_v13  ;;  %1749 = vmatprep.mubr.msk.bf16.mxu1 %vm2105_vm1, %v2104_v13  ;;  %v1641_v24 = vld [vmem:[%s2542_s2] ss:$0 sm:$0xff]  ;;  %s2107_s17 = smov 120   ;;  %s2108_s24 = smov 112  }
  0x3b   : > { %s1639_s29 = sshll.u32 %s473_s27, 3  ;;  %v1929_v32 = vld [vmem:[%s2544_s4] sm:$0xff]   ;;  %s2109_s27 = smov 88  }
  0x3c   : > { %s475_s22 = scalar_lea.vmem %s2540_s0, %s1639_s29  ;;  %s2110_s21 = smov 80  }
  0x3d   : > { %v2288_v0 = vld [vmem:[%s475_s22] sm:$0xff]  ;;  %1728 = vmatpush3.bf16.msra.mxu0 %v1927_v14  ;;  %s2111_s22 = smov 104   ;;  %s469_s29 = sand.u32 1, %s2084_s26  }
  0x3e   : > { %v513_v1 = vsel %vm481_vm0, %v2288_v0, 0.0  ;;  %1733 = vmatprep.subr.bf16.mxu0 %v2104_v13  ;;  %s1638_s16 = sshll.u32 %s469_s29, 3  ;;  %s1680_s23 = sshll.u32 %s2092_s28, 7 }
  0x3f   : > { %514 = vadd.xlane.f32.xlu0 %v513_v1  ;;  %s1523_s28 = scalar_lea.sflag [#allocation5], %s469_s29  ;;  %p2570_p10 = scmp.ne.s32.totalorder %s2563_s18, 0 }
  0x43   : > { %483 = vadd.xlane.f32.xlu0 %v513_v1 }
  0xc8   : > { %v515_v2 = vpop.xlane.xlu0 %514 }
  0xc9   : > { %v516_v3 = vmul.f32 0.03125, %v515_v2  ;;  %v761_v2 = vld [vmem:[%s2545_s5] sm:$0xf] }
  0xcb   : > { %v517_v4 = vsub.f32 %v2288_v0, %v516_v3  ;;  %v766_v3 = vsel %vm715_vm3, %v761_v2, 0 }
  0xcc   : > { %v484_v5 = vpop.xlane.xlu0 %483 }
  0xcd   : > { %v486_v6 = vmul.f32 0.03125, %v484_v5  ;;  %v518_v7 = vmul.f32 %v517_v4, %v517_v4 }
  0xcf   : > { %v487_v8 = vsub.f32 %v2288_v0, %v486_v6  ;;  %v519_v9 = vsel %vm481_vm0, %v518_v7, 0.0 }
  0xd0   : > { %520 = vadd.xlane.f32.xlu1 %v519_v9 }
  0xd1   : > { %v488_v10 = vmul.f32 %v487_v8, %v487_v8 }
  0xd3   : > { %v489_v11 = vsel %vm481_vm0, %v488_v10, 0.0 }
  0xd4   : > { %490 = vadd.xlane.f32.xlu1 %v489_v11 }
 0x159   : > { %v521_v15 = vpop.xlane.xlu1 %520 }
 0x15a   : > { %v522_v16 = vmul.f32 0.03125, %v521_v15 }
 0x15c   : > { %v523_v17 = vadd.f32 1e-05, %v522_v16 }
 0x15d   : > { %v491_v18 = vpop.xlane.xlu1 %490 }
 0x15e   : > { %1940 = vrsqrt.f32 %v523_v17  ;;  %v492_v19 = vmul.f32 0.03125, %v491_v18 }
 0x160   : > { %v493_v20 = vadd.f32 1e-05, %v492_v19 }
 0x162   : > { %1942 = vrsqrt.f32 %v493_v20  ;;  %v759_v20 = vld [vmem:[#allocation2] sm:$0xff] }
 0x16b   : > { %v1941_v21 = vpop.eup %1940 }
 0x16c   : > { %v525_v23 = vmul.f32 %v1941_v21, %v517_v4 }
 0x16e   : > { %v526_v25 = vmul.f32 %v1640_v22, %v525_v23 }
 0x16f   : > { %v1943_v26 = vpop.eup %1942 }
 0x170   : > { %v495_v27 = vmul.f32 %v1943_v26, %v487_v8  ;;  %v527_v28 = vadd.f32 %v1641_v24, %v526_v25 }
 0x172   : > { %v502_v30 = vmul.f32 %v1640_v22, %v495_v27  ;;  %v528_v31 = vpack.c.bf16 %v527_v28, %v527_v28 }
 0x174   : > { %1730 = vmatmul.mubr.msk.bf16.vlgmr.msra.gmra.mxu0 %vm481_vm0, %v528_v31  ;;  %v509_v33 = vadd.f32 %v1641_v24, %v502_v30 }
 0x175   : > { %1734 = vmatpush3.bf16.msra.mxu0 %v1928_v29  ;;  %1737 = vmatprep.mubr.msk.bf16.mxu0 %vm2105_vm1, %v2104_v13 }
 0x176   : > { %1735 = vmatprep.subr.bf16.mxu0 %v2104_v13  ;;  %v510_v34 = vpack.c.bf16 %v509_v33, %v509_v33 }
 0x179   : > { %1736 = vmatpush3.bf16.msra.mxu0 %v1929_v32 }
 0x17a   : > { %1741 = vmatprep.subr.bf16.mxu0 %v2104_v13 }
 0x17c   : > { %1738 = vmatmul.mubr.msk.bf16.vlgmr.msra.gmra.mxu0 %vm481_vm0, %v510_v34 }
 0x17d   : > { %1743 = vmatprep.mubr.msk.bf16.mxu0 %vm2105_vm1, %v2104_v13 }
 0x234   : > { %v583_v35 = vpop.f32.mrf.mxu0 }
 0x235   : > { %v2337_v45 = vpack.c.bf16 %v583_v35, %v583_v35  ;;  %v1653_v35 = vld [vmem:[%s2545_s5 + $0x4] sm:$0xf] }
 0x236   : > { %v1731_v36 = vpop.f32.mrf.mxu0 }
 0x237   : > { %v929_v36 = vsel %vm715_vm3, %v1653_v35, 0 }
 0x238   : > { %v586_v37 = vpop.f32.mrf.mxu0 }
 0x23a   : > { %v1732_v38 = vpop.f32.mrf.mxu0 }
 0x23c   : > { %v642_v39 = vpop.f32.mrf.mxu0 }
 0x23d   : > { %v2332_v40 = vpack.c.bf16 %v642_v39, %v642_v39 }
 0x23e   : > { %v1739_v41 = vpop.f32.mrf.mxu0 }
 0x23f   : > { %v655_v42 = vsel %vm650_vm2, %v2332_v40, 0 }
 0x240   : > { %v645_v43 = vpop.f32.mrf.mxu0  ;;  %1742 = vmatpush3.bf16.xpose.msra.mxu0 %v655_v42 }
 0x241   : > { %1753 = vmatprep.subr.bf16.mxu0 %v2104_v13 }
 0x242   : > { %v1740_v44 = vpop.f32.mrf.mxu0 }
 0x247   : > { %1744 = vmatmul.mubr.msk.bf16.vlgmr.msra.gmra.mxu0 %vm650_vm2, %v2337_v45 }
 0x248   : > { %1755 = vmatprep.mubr.msk.bf16.mxu0 %vm2105_vm1, %v2104_v13  ;;  %1754 = vmatpush3.bf16.msra.mxu0 %v766_v3 }
 0x249   : > { %1765 = vmatprep.subr.bf16.mxu0 %v2104_v13 }
 0x307   : > { %v691_v46 = vpop.f32.mrf.mxu0 }
 0x308   : > { %v697_v47 = vsel %vm650_vm2, %v691_v46, -inf }
 0x309   : > { %698 = vmax.xlane.f32.xlu0 %v697_v47  ;;  %v1745_v48 = vpop.f32.mrf.mxu0 }
 0x30b   : > { %v694_v49 = vpop.f32.mrf.mxu0 }
 0x30d   : > { %v1746_v50 = vpop.f32.mrf.mxu0 }
 0x31f   : > { %710 = vrot.lane.b32.xlu0 %v2332_v40, %s2106_s15  ;;  %s471_s15 = scalar_lea.vmem [#allocation8], %s1638_s16  ;;  %s2113_s16 = smov [#allocation8]  }
 0x392   : > { %v699_v51 = vpop.xlane.xlu0 %698 }
 0x393   : > { %v700_v52 = vsub.f32 %v691_v46, %v699_v51 }
 0x395   : > { %v701_v53 = vmul.f32 1.442695, %v700_v52 }
 0x396   : > { %v711_v54 = vpop.permute.xlu0 %710 }
 0x397   : > { %1944 = vpow2.f32 %v701_v53  ;;  %v717_v55 = vsel %vm715_vm3, %v711_v54, 0 }
 0x398   : > { %1748 = vmatpush3.bf16.msra.mxu1 %v717_v55 }
 0x399   : > { %1759 = vmatprep.subr.bf16.mxu1 %v2104_v13 }
 0x3a4   : > { %v1945_v56 = vpop.eup %1944 }
 0x3a5   : > { %v703_v57 = vsel %vm650_vm2, %v1945_v56, 0.0 }
 0x3a6   : > { %704 = vadd.xlane.f32.xlu1 %v703_v57 }
 0x3b7   : > { %813 = vrot.lane.b32.xlu1 %v2332_v40, %s2107_s17 }
 0x3bb   : > { %811 = vrot.lane.b32.xlu1 %v2337_v45, %s2107_s17  ;;  %s2112_s17 = smov 72  }
 0x42f   : > { %v705_v58 = vpop.xlane.xlu1 %704 }
 0x430   : > { %1946 = vrcp.f32 %v705_v58 }
 0x433   : > { %v814_v61 = vpop.permute.xlu1 %813 }
 0x434   : > { %v819_v63 = vsel %vm650_vm2, %v814_v61, 0 }
 0x437   : > { %v812_v1 = vpop.permute.xlu1 %811 }
 0x43d   : > { %v1947_v59 = vpop.eup %1946 }
 0x43e   : > { %v707_v60 = vmul.f32 %v1947_v59, %v1945_v56 }
 0x440   : > { %v708_v62 = vpack.c.bf16 %v707_v60, %v707_v60 }
 0x442   : > { %1750 = vmatmul.mubr.msk.bf16.vlgmr.msra.gmra.mxu1 %vm650_vm2, %v708_v62 }
 0x443   : > { %1760 = vmatpush3.bf16.xpose.msra.mxu1 %v819_v63  ;;  %1761 = vmatprep.mubr.msk.bf16.mxu1 %vm2105_vm1, %v2104_v13 }
 0x444   : > { %1771 = vmatprep.subr.bf16.mxu1 %v2104_v13 }
 0x44a   : > { %1762 = vmatmul.mubr.msk.bf16.vlgmr.msra.gmra.mxu1 %vm650_vm2, %v812_v1 }
 0x44b   : > { %1773 = vmatprep.mubr.msk.bf16.mxu1 %vm2105_vm1, %v2104_v13  ;;  %1772 = vmatpush3.bf16.msra.mxu1 %v929_v36 }
 0x44c   : > { %1783 = vmatprep.subr.bf16.mxu1 %v2104_v13 }
 0x502   : > { %v753_v4 = vpop.f32.mrf.mxu1 }
 0x503   : > { %v760_v5 = vpack.c.bf16 %v753_v4, %v753_v4 }
 0x504   : > { %v1751_v6 = vpop.f32.mrf.mxu1 }
 0x505   : > { %1756 = vmatmul.mubr.msk.bf16.vlgmr.msra.gmra.mxu0 %vm650_vm2, %v760_v5  ;;  %v1657_v5 = vld [vmem:[%s2545_s5 + $0x8] sm:$0xf] }
 0x506   : > { %v756_v7 = vpop.f32.mrf.mxu1  ;;  %1767 = vmatprep.mubr.msk.bf16.mxu0 %vm2105_vm1, %v2104_v13  ;;  %v1091_v6 = vsel %vm715_vm3, %v1657_v5, 0 }
 0x508   : > { %v1752_v8 = vpop.f32.mrf.mxu1 }
 0x50a   : > { %v855_v9 = vpop.f32.mrf.mxu1 }
 0x50b   : > { %v861_v10 = vsel %vm650_vm2, %v855_v9, -inf }
 0x50c   : > { %862 = vmax.xlane.f32.xlu1 %v861_v10  ;;  %v1763_v11 = vpop.f32.mrf.mxu1 }
 0x50e   : > { %v858_v12 = vpop.f32.mrf.mxu1 }
 0x510   : > { %v1764_v14 = vpop.f32.mrf.mxu1 }
 0x51d   : > { %975 = vrot.lane.b32.xlu1 %v2332_v40, %s2108_s24 }
 0x521   : > { %973 = vrot.lane.b32.xlu1 %v2337_v45, %s2108_s24  ;;  %s2493_s24 = scalar_lea.hbm %s2553_s13, %s1680_s23 }
 0x595   : > { %v863_v15 = vpop.xlane.xlu1 %862 }
 0x596   : > { %v864_v16 = vsub.f32 %v855_v9, %v863_v15 }
 0x598   : > { %v865_v17 = vmul.f32 1.442695, %v864_v16 }
 0x599   : > { %v976_v31 = vpop.permute.xlu1 %975 }
 0x59a   : > { %1948 = vpow2.f32 %v865_v17  ;;  %v981_v33 = vsel %vm650_vm2, %v976_v31, 0 }
 0x59d   : > { %v974_v34 = vpop.permute.xlu1 %973 }
 0x5a7   : > { %v1949_v18 = vpop.eup %1948 }
 0x5a8   : > { %v867_v19 = vsel %vm650_vm2, %v1949_v18, 0.0 }
 0x5a9   : > { %868 = vadd.xlane.f32.xlu0 %v867_v19 }
 0x5bf   : > { %873 = vrot.lane.b32.xlu0 %v2332_v40, %s2109_s27 }
 0x5c5   : > { %v802_v21 = vpop.f32.mrf.mxu0 }
 0x5c6   : > { %v808_v22 = vadd.f32 %v802_v21, %v759_v20 }
 0x5c7   : > { %v1757_v23 = vpop.f32.mrf.mxu0 }
 0x5c8   : > { %809 = vst.msk [vmem:[#allocation2] sm:$0xff] %vm481_vm0, %v808_v22 }
 0x5c9   : > { %v805_v24 = vpop.f32.mrf.mxu0 }
 0x5cb   : > { %v1758_v25 = vpop.f32.mrf.mxu0 }
 0x5cc   : > { %v1661_v25 = vld [vmem:[%s2545_s5 + $0xc] sm:$0xf] }
 0x5cf   : > { %v921_v56 = vld [vmem:[#allocation2] sm:$0xff] }
 0x632   : > { %v869_v26 = vpop.xlane.xlu0 %868 }
 0x633   : > { %1950 = vrcp.f32 %v869_v26 }
 0x636   : > { %v874_v27 = vpop.permute.xlu0 %873 }
 0x637   : > { %v879_v28 = vsel %vm715_vm3, %v874_v27, 0  ;;  %v1253_v27 = vsel %vm715_vm3, %v1661_v25, 0 }
 0x638   : > { %1766 = vmatpush3.bf16.msra.mxu0 %v879_v28 }
 0x639   : > { %1777 = vmatprep.subr.bf16.mxu0 %v2104_v13 }
 0x640   : > { %v1951_v29 = vpop.eup %1950 }
 0x641   : > { %v871_v30 = vmul.f32 %v1951_v29, %v1949_v18 }
 0x643   : > { %v872_v32 = vpack.c.bf16 %v871_v30, %v871_v30 }
 0x645   : > { %1768 = vmatmul.mubr.msk.bf16.vlgmr.msra.gmra.mxu0 %vm650_vm2, %v872_v32 }
 0x646   : > { %1778 = vmatpush3.bf16.xpose.msra.mxu0 %v981_v33  ;;  %1779 = vmatprep.mubr.msk.bf16.mxu0 %vm2105_vm1, %v2104_v13 }
 0x647   : > { %1789 = vmatprep.subr.bf16.mxu0 %v2104_v13 }
 0x64d   : > { %1780 = vmatmul.mubr.msk.bf16.vlgmr.msra.gmra.mxu0 %vm650_vm2, %v974_v34 }
 0x64e   : > { %1791 = vmatprep.mubr.msk.bf16.mxu0 %vm2105_vm1, %v2104_v13  ;;  %1790 = vmatpush3.bf16.msra.mxu0 %v1091_v6 }
 0x64f   : > { %1801 = vmatprep.subr.bf16.mxu0 %v2104_v13 }
 0x705   : > { %v915_v37 = vpop.f32.mrf.mxu0 }
 0x706   : > { %v922_v38 = vpack.c.bf16 %v915_v37, %v915_v37 }
 0x707   : > { %v1769_v39 = vpop.f32.mrf.mxu0 }
 0x708   : > { %1774 = vmatmul.mubr.msk.bf16.vlgmr.msra.gmra.mxu1 %vm650_vm2, %v922_v38 }
 0x709   : > { %v918_v41 = vpop.f32.mrf.mxu0  ;;  %1785 = vmatprep.mubr.msk.bf16.mxu1 %vm2105_vm1, %v2104_v13 }
 0x70b   : > { %v1770_v42 = vpop.f32.mrf.mxu0 }
 0x70d   : > { %v1017_v43 = vpop.f32.mrf.mxu0 }
 0x70e   : > { %v1023_v44 = vsel %vm650_vm2, %v1017_v43, -inf }
 0x70f   : > { %1024 = vmax.xlane.f32.xlu0 %v1023_v44  ;;  %v1781_v46 = vpop.f32.mrf.mxu0 }
 0x711   : > { %v1020_v47 = vpop.f32.mrf.mxu0 }
 0x713   : > { %v1782_v48 = vpop.f32.mrf.mxu0 }
 0x725   : > { %1035 = vrot.lane.b32.xlu0 %v2332_v40, %s2110_s21  ;;  %s2020_s21 = sshll.u32 %s2113_s16, 4  ;;  %s2021_s21 = int_to_ptr.vmem [resolvable:$false] %s2020_s21 }
 0x729   : > { %1135 = vrot.lane.b32.xlu0 %v2337_v45, %s2111_s22 }
 0x798   : > { %v1025_v49 = vpop.xlane.xlu0 %1024 }
 0x799   : > { %v1026_v50 = vsub.f32 %v1017_v43, %v1025_v49 }
 0x79b   : > { %v1027_v51 = vmul.f32 1.442695, %v1026_v50  ;;  %v1663_v50 = vld [vmem:[%s2546_s6] ss:$0 sm:$0xff] }
 0x79c   : > { %v1036_v52 = vpop.permute.xlu0 %1035 }
 0x79d   : > { %1952 = vpow2.f32 %v1027_v51  ;;  %v1041_v53 = vsel %vm715_vm3, %v1036_v52, 0 }
 0x79e   : > { %1784 = vmatpush3.bf16.msra.mxu1 %v1041_v53 }
 0x79f   : > { %1795 = vmatprep.subr.bf16.mxu1 %v2104_v13 }
 0x7a0   : > { %v1136_v4 = vpop.permute.xlu0 %1135 }
 0x7aa   : > { %v1953_v54 = vpop.eup %1952 }
 0x7ab   : > { %v1029_v55 = vsel %vm650_vm2, %v1953_v54, 0.0 }
 0x7ac   : > { %1030 = vadd.xlane.f32.xlu1 %v1029_v55 }
 0x7bd   : > { %1137 = vrot.lane.b32.xlu1 %v2332_v40, %s2111_s22  ;;  %s2022_s22 = scalar_lea.vmem %s2021_s21, 256 }
 0x7c8   : > { %v965_v57 = vpop.f32.mrf.mxu1 }
 0x7c9   : > { %v971_v58 = vadd.f32 %v965_v57, %v921_v56 }
 0x7ca   : > { %v1775_v45 = vpop.f32.mrf.mxu1 }
 0x7cb   : > { %972 = vst.msk [vmem:[#allocation2] sm:$0xff] %vm481_vm0, %v971_v58  ;;  %v1930_v45 = vld [vmem:[%s2549_s9 + $0x8] sm:$0xff]  }
 0x7cc   : > { %v968_v59 = vpop.f32.mrf.mxu1 }
 0x7cd   : > { %v1932_v59 = vld [vmem:[%s2551_s11 + $0x38] sm:$0xff]  }
 0x7ce   : > { %v1776_v60 = vpop.f32.mrf.mxu1 }
 0x7cf   : > { %v1933_v60 = vld [vmem:[%s2551_s11 + $0x30] sm:$0xff]  }
 0x7d2   : > { %v1083_v23 = vld [vmem:[#allocation2] sm:$0xff] }
 0x835   : > { %v1031_v61 = vpop.xlane.xlu1 %1030 }
 0x836   : > { %1954 = vrcp.f32 %v1031_v61 }
 0x839   : > { %v1138_v1 = vpop.permute.xlu1 %1137 }
 0x83a   : > { %v1143_v3 = vsel %vm650_vm2, %v1138_v1, 0 }
 0x843   : > { %v1955_v62 = vpop.eup %1954 }
 0x844   : > { %v1033_v63 = vmul.f32 %v1955_v62, %v1953_v54 }
 0x846   : > { %v1034_v2 = vpack.c.bf16 %v1033_v63, %v1033_v63 }
 0x848   : > { %1786 = vmatmul.mubr.msk.bf16.vlgmr.msra.gmra.mxu1 %vm650_vm2, %v1034_v2  ;;  %v1664_v2 = vld [vmem:[%s2547_s7] ss:$0 sm:$0xff] }
 0x849   : > { %1796 = vmatpush3.bf16.xpose.msra.mxu1 %v1143_v3  ;;  %1797 = vmatprep.mubr.msk.bf16.mxu1 %vm2105_vm1, %v2104_v13 }
 0x84a   : > { %1807 = vmatprep.subr.bf16.mxu1 %v2104_v13 }
 0x850   : > { %1798 = vmatmul.mubr.msk.bf16.vlgmr.msra.gmra.mxu1 %vm650_vm2, %v1136_v4  ;;  %v1665_v4 = vld [vmem:[#allocation3] ss:$0 sm:$0xff] }
 0x851   : > { %1809 = vmatprep.mubr.msk.bf16.mxu1 %vm2105_vm1, %v2104_v13  ;;  %1808 = vmatpush3.bf16.msra.mxu1 %v1253_v27 }
 0x852   : > { %1821 = vmatprep.subr.bf16.mxu1 %v2104_v13 }
 0x908   : > { %v1077_v7 = vpop.f32.mrf.mxu1 }
 0x909   : > { %v1084_v8 = vpack.c.bf16 %v1077_v7, %v1077_v7 }
 0x90a   : > { %v1787_v9 = vpop.f32.mrf.mxu1 }
 0x90b   : > { %1792 = vmatmul.mubr.msk.bf16.vlgmr.msra.gmra.mxu0 %vm650_vm2, %v1084_v8  ;;  %v1934_v8 = vld [vmem:[%s2551_s11 + $0x28] sm:$0xff]   ;;  %v1935_v9 = vld [vmem:[%s2551_s11 + $0x20] sm:$0xff]  }
 0x90c   : > { %v1080_v10 = vpop.f32.mrf.mxu1  ;;  %1803 = vmatprep.mubr.msk.bf16.mxu0 %vm2105_vm1, %v2104_v13 }
 0x90d   : > { %v1936_v10 = vld [vmem:[%s2551_s11 + $0x18] sm:$0xff]  }
 0x90e   : > { %v1788_v11 = vpop.f32.mrf.mxu1 }
 0x90f   : > { %v1937_v11 = vld [vmem:[%s2551_s11 + $0x10] sm:$0xff]  }
 0x910   : > { %v1179_v12 = vpop.f32.mrf.mxu1 }
 0x911   : > { %v1185_v14 = vsel %vm650_vm2, %v1179_v12, -inf }
 0x912   : > { %1186 = vmax.xlane.f32.xlu1 %v1185_v14  ;;  %v1799_v15 = vpop.f32.mrf.mxu1  ;;  %v1939_v14 = vld [vmem:[%s2551_s11] sm:$0xff]  }
 0x913   : > { %v1666_v15 = vld [vmem:[#allocation6] ss:$0 sm:$0xff] }
 0x914   : > { %v1182_v16 = vpop.f32.mrf.mxu1 }
 0x916   : > { %v1800_v17 = vpop.f32.mrf.mxu1 }
 0x99b   : > { %v1187_v18 = vpop.xlane.xlu1 %1186 }
 0x99c   : > { %v1188_v19 = vsub.f32 %v1179_v12, %v1187_v18  ;;  %v1938_v12 = vld [vmem:[%s2551_s11 + $0x8] sm:$0xff]  }
 0x99e   : > { %v1189_v20 = vmul.f32 1.442695, %v1188_v19 }
 0x9a0   : > { %1956 = vpow2.f32 %v1189_v20 }
 0x9ad   : > { %v1957_v21 = vpop.eup %1956 }
 0x9ae   : > { %v1191_v22 = vsel %vm650_vm2, %v1957_v21, 0.0 }
 0x9af   : > { %1192 = vadd.xlane.f32.xlu0 %v1191_v22 }
 0x9c5   : > { %1197 = vrot.lane.b32.xlu0 %v2332_v40, %s2112_s17  ;;  %s1537_s17 = sshll.u32 %s471_s15, 4  ;;  %s2495_s17 = int_to_ptr.vmem [resolvable:$true] %s1537_s17 }
 0x9c6   : > { %s2016_s27 = scalar_lea.vmem %s2495_s17, 128  ;;  %p2023_p0 = scmp.lt.s32.totalorder %s2495_s17, %s2021_s21 }
 0x9c7   : > { %p2017_p8 = scmp.ne.s32.totalorder %s2495_s17, %s2016_s27  ;;  %p2024_p6 = scmp.lt.s32.totalorder %s2022_s22, %s2016_s27 }
 0x9c9   : > { %p2018_p11 = pnand %p2017_p8, %p2570_p10  ;;  %p2025_p7 = por %p2024_p6, %p2023_p0 }
 0x9cb   : > { %v1127_v24 = vpop.f32.mrf.mxu0  ;;  %p2019_p13 = pneg %p2018_p11 }
 0x9cc   : > { %v1133_v26 = vadd.f32 %v1127_v24, %v1083_v23 }
 0x9cd   : > { %v1793_v28 = vpop.f32.mrf.mxu0  ;;  %p2026_p9 = pnand %p2025_p7, %p2019_p13 }
 0x9ce   : > { %1134 = vst.msk [vmem:[#allocation2] sm:$0xff] %vm481_vm0, %v1133_v26  ;;  %v1670_v26 = vld [vmem:[%s2552_s12] ss:$0 sm:$0xff] }
 0x9cf   : > { %v1130_v29 = vpop.f32.mrf.mxu0 }
 0x9d1   : > { %v1794_v30 = vpop.f32.mrf.mxu0 }
 0x9d5   : > { %v1245_v42 = vld [vmem:[#allocation2] sm:$0xff] }
 0xa38   : > { %v1193_v31 = vpop.xlane.xlu0 %1192 }
 0xa39   : > { %1958 = vrcp.f32 %v1193_v31 }
 0xa3c   : > { %v1198_v40 = vpop.permute.xlu0 %1197 }
 0xa3d   : > { %v1203_v32 = vsel %vm715_vm3, %v1198_v40, 0 }
 0xa3e   : > { %1802 = vmatpush3.bf16.msra.mxu0 %v1203_v32 }
 0xa3f   : > { %1813 = vmatprep.subr.bf16.mxu0 %v2104_v13 }
 0xa46   : > { %v1959_v33 = vpop.eup %1958 }
 0xa47   : > { %v1195_v34 = vmul.f32 %v1959_v33, %v1957_v21 }
 0xa49   : > { %v1196_v35 = vpack.c.bf16 %v1195_v34, %v1195_v34 }
 0xa4b   : > { %1804 = vmatmul.mubr.msk.bf16.vlgmr.msra.gmra.mxu0 %vm650_vm2, %v1196_v35 }
 0xa4c   : > { %1817 = vmatprep.mubr.msk.bf16.mxu0 %vm2105_vm1, %v2104_v13  ;;  %1814 = vmatpush3.bf16.msra.mxu0 %v1930_v45 }
 0xa4d   : > { %1815 = vmatprep.subr.bf16.mxu0 %v2104_v13 }
 0xb0b   : > { %v1239_v36 = vpop.f32.mrf.mxu0 }
 0xb0c   : > { %v1246_v37 = vpack.c.bf16 %v1239_v36, %v1239_v36 }
 0xb0d   : > { %v1805_v38 = vpop.f32.mrf.mxu0 }
 0xb0e   : > { %1810 = vmatmul.mubr.msk.bf16.vlgmr.msra.gmra.mxu1 %vm650_vm2, %v1246_v37 }
 0xb0f   : > { %v1242_v39 = vpop.f32.mrf.mxu0  ;;  %1837 = vmatprep.mubr.msk.bf16.mxu1 %vm2105_vm1, %v2104_v13  ;;  %1822 = vmatpush3.bf16.msra.mxu1 %v1932_v59 }
 0xb10   : > { %1823 = vmatprep.subr.bf16.mxu1 %v2104_v13 }
 0xb11   : > { %v1806_v41 = vpop.f32.mrf.mxu0 }
 0xb13   : > { %1824 = vmatpush3.bf16.msra.mxu1 %v1933_v60 }
 0xb14   : > { %1825 = vmatprep.subr.bf16.mxu1 %v2104_v13 }
 0xb17   : > { %1826 = vmatpush3.bf16.msra.mxu1 %v1934_v8 }
 0xb18   : > { %1827 = vmatprep.subr.bf16.mxu1 %v2104_v13 }
 0xb1b   : > { %1828 = vmatpush3.bf16.msra.mxu1 %v1935_v9 }
 0xb1c   : > { %1829 = vmatprep.subr.bf16.mxu1 %v2104_v13 }
 0xb1f   : > { %1830 = vmatpush3.bf16.msra.mxu1 %v1936_v10 }
 0xb20   : > { %1831 = vmatprep.subr.bf16.mxu1 %v2104_v13 }
 0xb23   : > { %1832 = vmatpush3.bf16.msra.mxu1 %v1937_v11 }
 0xb24   : > { %1833 = vmatprep.subr.bf16.mxu1 %v2104_v13 }
 0xb27   : > { %1834 = vmatpush3.bf16.msra.mxu1 %v1938_v12 }
 0xb28   : > { %1835 = vmatprep.subr.bf16.mxu1 %v2104_v13 }
 0xb2b   : > { %1836 = vmatpush3.bf16.msra.mxu1 %v1939_v14 }
 0xbce   : > { %v1289_v43 = vpop.f32.mrf.mxu1 }
 0xbcf   : > { %v1295_v44 = vadd.f32 %v1289_v43, %v1245_v42 }
 0xbd0   : > { %v1811_v46 = vpop.f32.mrf.mxu1 }
 0xbd1   : > { %1296 = vst.msk [vmem:[#allocation2] sm:$0xff] %vm481_vm0, %v1295_v44 }
 0xbd2   : > { %v1292_v47 = vpop.f32.mrf.mxu1 }
 0xbd4   : > { %v1812_v48 = vpop.f32.mrf.mxu1 }
 0xbd8   : > { %v1297_v49 = vld [vmem:[#allocation2] sm:$0xff] }
 0xbd9   : > { %v1298_v51 = vadd.f32 %v1297_v49, %v2288_v0  ;;  %v1931_v0 = vld [vmem:[%s2549_s9] sm:$0xff]  }
 0xbda   : > { %1816 = vmatpush3.bf16.msra.mxu0 %v1931_v0 }
 0xbdb   : > { %v2436_v52 = vadd.f32 %v1663_v50, %v1298_v51 }
 0xbdd   : > { %v1309_v53 = vsel %vm481_vm0, %v2436_v52, 0.0 }
 0xbde   : > { %1310 = vadd.xlane.f32.xlu1 %v1309_v53 }
 0xc67   : > { %v1311_v54 = vpop.xlane.xlu1 %1310 }
 0xc68   : > { %v1312_v55 = vmul.f32 0.03125, %v1311_v54 }
 0xc6a   : > { %v1313_v56 = vsub.f32 %v2436_v52, %v1312_v55 }
 0xc6c   : > { %v1314_v57 = vmul.f32 %v1313_v56, %v1313_v56 }
 0xc6e   : > { %v1315_v58 = vsel %vm481_vm0, %v1314_v57, 0.0 }
 0xc6f   : > { %1316 = vadd.xlane.f32.xlu1 %v1315_v58 }
 0xcf8   : > { %v1317_v61 = vpop.xlane.xlu1 %1316 }
 0xcf9   : > { %v1318_v62 = vmul.f32 0.03125, %v1317_v61 }
 0xcfb   : > { %v1319_v63 = vadd.f32 1e-05, %v1318_v62 }
 0xcfd   : > { %1960 = vrsqrt.f32 %v1319_v63 }
 0xd0a   : > { %v1961_v1 = vpop.eup %1960 }
 0xd0b   : > { %v1321_v3 = vmul.f32 %v1961_v1, %v1313_v56 }
 0xd0d   : > { %v1328_v5 = vmul.f32 %v1664_v2, %v1321_v3 }
 0xd0f   : > { %v1335_v6 = vadd.f32 %v1665_v4, %v1328_v5 }
 0xd11   : > { %v1336_v7 = vpack.c.bf16 %v1335_v6, %v1335_v6 }
 0xd13   : > { %1818 = vmatmul.mubr.msk.bf16.vlgmr.msra.gmra.mxu0 %vm481_vm0, %v1336_v7 }
 0xdd3   : > { %v1397_v16 = vpop.f32.mrf.mxu0 }
 0xdd4   : > { %v1398_v17 = vadd.f32 %v1666_v15, %v1397_v16 }
 0xdd5   : > { %v1819_v18 = vpop.f32.mrf.mxu0 }
 0xdd6   : > { %v1404_v19 = vmul.f32 0.70710677, %v1398_v17  ;;  %v1403_v23 = vmul.f32 0.5, %v1398_v17 }
 0xdd7   : > { %v1400_v20 = vpop.f32.mrf.mxu0 }
 0xdd8   : > { %1962 = verf.f32 %v1404_v19 }
 0xdd9   : > { %v1820_v21 = vpop.f32.mrf.mxu0 }
 0xde5   : > { %v1963_v22 = vpop.eup %1962 }
 0xde6   : > { %v1406_v24 = vadd.f32 1.0, %v1963_v22 }
 0xde8   : > { %v1407_v25 = vmul.f32 %v1406_v24, %v1403_v23 }
 0xdea   : > { %v1408_v13 = vpack.c.bf16 %v1407_v25, %v1407_v25 }
 0xdec   : > { %1838 = vmatmul.mubr.bf16.vlgmr.msra.gmra.mxu1 %v1408_v13 }
 0xeac   : > { %v1514_v27 = vpop.f32.mrf.mxu1 }
 0xead   : > { %v1515_v28 = vadd.f32 %v1670_v26, %v1514_v27 }
 0xeae   : > { %v1839_v29 = vpop.f32.mrf.mxu1 }
 0xeaf   : > { %v1520_v30 = vadd.f32 %v1515_v28, %v2436_v52 }
 0xeb0   : > { %v1517_v31 = vpop.f32.mrf.mxu1 }
 0xeb1   : > { %1521 = vst.msk [vmem:[%s471_s15] sm:$0xff] %vm481_vm0, %v1520_v30 }
 0xeb2   : > { %v1840_v40 = vpop.f32.mrf.mxu1 }
 0xeb3   : > { %2029 = shalt.err (!%p2026_p9)
}
 0xeb4   : > { %s2030_s23 = scalar_lea.hbm %s2493_s24, 128  ;;  %s2034_s19 = scalar_lea.hbm %s2553_s13, 256 }
 0xeb5   : > { %p2031_p12 = scmp.ne.s32.totalorder %s2493_s24, %s2030_s23  ;;  %p2035_p5 = scmp.lt.s32.totalorder %s2493_s24, %s2553_s13 }
 0xeb6   : > { %p2036_p3 = scmp.lt.s32.totalorder %s2034_s19, %s2030_s23 }
 0xeb7   : > { %p2032_p1 = pnand %p2031_p12, %p2570_p10 }
 0xeb8   : > { %p2037_p4 = por %p2036_p3, %p2035_p5 }
 0xeb9   : > { %p2033_p2 = pneg %p2032_p1 }
 0xebb   : > { %p2038_p8 = pnand %p2037_p4, %p2033_p2 }
 0xebd   : > { %2041 = shalt.err (!%p2038_p8)
}
 0xebe   : > { %1849 = dma.vmem_to_hbm [thread:$0]  (%p2570_p10), %s2495_s17, 128, %s2493_s24, %s1523_s28  }
 0xebf PF: > { %p1866_p11 = scmp.ge.s32.totalorder %s2100_s30, 2  ;;  %s1549_s27 = sand.u32 1, %s2080_s25  }
 0xec0   : > { %p2571_p13 = scmp.ne.s32.totalorder %s2564_s20, 0  ;;  %s1550_s21 = scalar_lea.sflag [#allocation5], %s1549_s27 }
 0xec2   : > { %p1859_p0 = pnand %p1866_p11, %p2571_p13 }
 0xec4   : > { %p1860_p6 = pneg %p1859_p0 }
 0xec6   : > { %2075 = dma.done.wait (%p1860_p6), %s1550_s21, 128  }
 0xec7   : > { %2077 = vsyncadd (%p1860_p6), %s1550_s21, 4294967168  ;;  %s28_s30 = sadd.s32 1, %s2100_s30   ;;  %s2572_s18 = sld [smem:[#allocation12_spill]] }
 0xec8   : > { %p25_p7 = scmp.ge.s32.totalorder %s28_s30, 4   ;;  %s2573_s27 = sld [smem:[#allocation15_spill]] }
 0xec9   : > { %s2574_s28 = sld [smem:[#allocation13_spill]]  ;;  %s2576_s25 = smov %s2084_s26 }
 0xeca   : > { %s2575_s29 = sld [smem:[#allocation14_spill]]  ;;  %27 = sbr.rel (!%p25_p7) target bundleno = 6 (0x6), region = 120 }
 0xecd   : > { %s2577_s26 = smov %s2572_s18 }
 0xecf   :  { %1555 = vsyncpa [#allocation4], 1 }
 0xed0   :  { %1557 = vsyncpa [#allocation4 + $0x1], 1 }
 0xed1   :  { %1558 = vsyncpa [#allocation7], 1 }
 0xed2   :  { %1559 = vsyncpa [#allocation5], 1 }
 0xed3   :  { %1561 = vsyncpa [#allocation5 + $0x1], 1 }

</bundles_post_ra>
